<compile_context>
chip_gen: v7x
topology: tpu7x:2x2x1
jax: 0.10.0
libtpu: 0.0.40
codegen_flags: <defaults>
</compile_context>

<pallas_src>
import math
import functools

import jax
import jax.numpy as jnp
from jax.experimental import pallas as pl
from jax.experimental.pallas import tpu as pltpu


def _mhsa_kernel(xq_ref, xk_ref, xv_ref, w_ref, b_ref,   # inputs
                 o_ref,                                   # output
                 qp_ref, m_ref, l_ref, acc_ref,           # scratch
                 *, num_heads: int, d_k: int, tq: int, tk: int, e: int):
    ki = pl.program_id(2)
    nk = pl.num_programs(2)

    # ---- init (once per (batch, q-tile)): project the q tile, reset stats ----
    @pl.when(ki == 0)
    def _init():
        xq = xq_ref[...].astype(jnp.bfloat16)                           # (tq, E)
        qp = jnp.dot(xq, w_ref[0], preferred_element_type=jnp.float32) + b_ref[0]
        qp = qp.reshape(tq, num_heads, d_k).transpose(1, 0, 2)          # (H, tq, dk)
        qp_ref[...] = qp.astype(jnp.bfloat16)
        m_ref[...] = jnp.full(m_ref.shape, -jnp.inf, m_ref.dtype)
        l_ref[...] = jnp.zeros(l_ref.shape, l_ref.dtype)
        acc_ref[...] = jnp.zeros(acc_ref.shape, acc_ref.dtype)

    # ---- project the current k/v tile (bf16 MXU, f32 accumulate) ----
    xk = xk_ref[...].astype(jnp.bfloat16)                               # (tk, E)
    xv = xv_ref[...].astype(jnp.bfloat16)
    kp = jnp.dot(xk, w_ref[1], preferred_element_type=jnp.float32) + b_ref[1]
    vp = jnp.dot(xv, w_ref[2], preferred_element_type=jnp.float32) + b_ref[2]
    kp = kp.reshape(tk, num_heads, d_k).transpose(1, 0, 2).astype(jnp.bfloat16)
    vp = vp.reshape(tk, num_heads, d_k).transpose(1, 0, 2).astype(jnp.bfloat16)

    # ---- head-batched attention with online softmax (scale folded in wq) ----
    s = jnp.einsum("hqd,hkd->hqk", qp_ref[...], kp,
                   preferred_element_type=jnp.float32)                  # (H, tq, tk)
    m_prev = m_ref[...]
    m_new = jnp.maximum(m_prev, jnp.max(s, axis=-1, keepdims=True))
    alpha = jnp.exp(m_prev - m_new)                                     # f32 VPU/EUP
    p = jnp.exp(s - m_new)
    l_ref[...] = alpha * l_ref[...] + jnp.sum(p, axis=-1, keepdims=True)
    acc_ref[...] = alpha * acc_ref[...] + jnp.einsum(
        "hqk,hkd->hqd", p.astype(jnp.bfloat16), vp,
        preferred_element_type=jnp.float32)
    m_ref[...] = m_new

    # ---- finalize: normalize, merge heads, output projection ----
    @pl.when(ki == nk - 1)
    def _final():
        ctx = acc_ref[...] * pl.reciprocal(l_ref[...], approx=True)     # (H, tq, dk)
        ctx = ctx.transpose(1, 0, 2).reshape(tq, e).astype(jnp.bfloat16)
        out = jnp.dot(ctx, w_ref[3], preferred_element_type=jnp.float32) + b_ref[3]
        o_ref[...] = out.astype(o_ref.dtype)


def multi_head_self_attention(q, k, v, params, *, num_heads: int,
                              block_q: int = 128, block_k: int = 128):
    """params: dict with wq, bq, wk, bk, wv, bv, wo, bo.
    Weights are (E_in, E_out) (already transposed from torch layout),
    biases are (1, E)."""
    B, S, E = q.shape
    assert E % num_heads == 0
    d_k = E // num_heads

    tq = min(block_q, S)
    tk = min(block_k, S)
    assert S % tq == 0 and S % tk == 0

    # Pack weights: (4, E, E) bf16, 1/sqrt(d_k) folded into the q projection.
    scale = 1.0 / math.sqrt(d_k)
    w_packed = jnp.stack([params["wq"] * scale, params["wk"],
                          params["wv"], params["wo"]]).astype(jnp.bfloat16)
    b_packed = jnp.stack([params["bq"] * scale, params["bk"],
                          params["bv"], params["bo"]]).astype(jnp.float32)  # (4,1,E)

    kernel = functools.partial(_mhsa_kernel, num_heads=num_heads, d_k=d_k,
                               tq=tq, tk=tk, e=E)

    grid = (B, S // tq, S // tk)

    q_spec = pl.BlockSpec((pl.Squeezed(), tq, E), lambda b, qi, ki: (b, qi, 0))
    kv_spec = pl.BlockSpec((pl.Squeezed(), tk, E), lambda b, qi, ki: (b, ki, 0))
    w_spec = pl.BlockSpec((4, E, E), lambda b, qi, ki: (0, 0, 0))
    bias_spec = pl.BlockSpec((4, 1, E), lambda b, qi, ki: (0, 0, 0))
    out_spec = pl.BlockSpec((pl.Squeezed(), tq, E), lambda b, qi, ki: (b, qi, 0))

    return pl.pallas_call(
        kernel,
        out_shape=jax.ShapeDtypeStruct((B, S, E), q.dtype),
        grid_spec=pltpu.PrefetchScalarGridSpec(
            num_scalar_prefetch=0,
            grid=grid,
            in_specs=[q_spec, kv_spec, kv_spec, w_spec, bias_spec],
            out_specs=out_spec,
            scratch_shapes=[
                pltpu.VMEM((num_heads, tq, d_k), jnp.bfloat16),   # projected q tile
                pltpu.VMEM((num_heads, tq, 1), jnp.float32),      # running max
                pltpu.VMEM((num_heads, tq, 1), jnp.float32),      # running sum
                pltpu.VMEM((num_heads, tq, d_k), jnp.float32),    # running context
            ],
        ),
        compiler_params=pltpu.CompilerParams(
            dimension_semantics=("parallel", "parallel", "arbitrary")),
    )(q, k, v, w_packed, b_packed)


def _reference(q, k, v, params, num_heads):
    """Pure-JAX f32 reference matching the PyTorch forward (eval, no mask)."""
    B, S, E = q.shape
    d_k = E // num_heads

    def lin(x, w, b):
        return x @ w + b

    qp = lin(q, params["wq"], params["bq"]).reshape(B, S, num_heads, d_k).transpose(0, 2, 1, 3)
    kp = lin(k, params["wk"], params["bk"]).reshape(B, S, num_heads, d_k).transpose(0, 2, 1, 3)
    vp = lin(v, params["wv"], params["bv"]).reshape(B, S, num_heads, d_k).transpose(0, 2, 1, 3)

    scores = jnp.einsum("bhqd,bhkd->bhqk", qp, kp) / math.sqrt(d_k)
    attn = jax.nn.softmax(scores, axis=-1)
    ctx = jnp.einsum("bhqk,bhkd->bhqd", attn, vp)
    ctx = ctx.transpose(0, 2, 1, 3).reshape(B, S, E)
    return lin(ctx, params["wo"], params["bo"])


def _init_params(key, embedding_dim):
    """Deterministic nn.Linear-style init: U(-1/sqrt(fan_in), 1/sqrt(fan_in))."""
    E = embedding_dim
    bound = 1.0 / math.sqrt(E)
    names = ["q", "k", "v", "o"]
    params = {}
    keys = jax.random.split(key, 2 * len(names))
    for i, n in enumerate(names):
        w = jax.random.uniform(keys[2 * i], (E, E), jnp.float32, -bound, bound)
        b = jax.random.uniform(keys[2 * i + 1], (1, E), jnp.float32, -bound, bound)
        params[f"w{n}"] = w   # stored as (E_in, E_out) directly
        params[f"b{n}"] = b
    return params


if __name__ == "__main__":
    num_heads = 4
    embedding_dim = 32
    batch, seq = 2, 16   # seq=16 with 8-row tiles exercises the flash kv loop

    root = jax.random.PRNGKey(0)
    kq, kk, kv, kp = jax.random.split(root, 4)
    q = jax.random.normal(kq, (batch, seq, embedding_dim), jnp.float32)
    k = jax.random.normal(kk, (batch, seq, embedding_dim), jnp.float32)
    v = jax.random.normal(kv, (batch, seq, embedding_dim), jnp.float32)

    params = _init_params(kp, embedding_dim)

    out = multi_head_self_attention(q, k, v, params, num_heads=num_heads,
                                    block_q=8, block_k=8)
    out = jax.block_until_ready(out)

    ref = _reference(q, k, v, params, num_heads)
    assert out.shape == (batch, seq, embedding_dim)
    # bf16 MXU inputs (f32 accumulation) -> small expected drift vs f32 reference.
    err = jnp.max(jnp.abs(out - ref))
    assert jnp.allclose(out, ref, atol=5e-2, rtol=5e-2), f"max abs err {err}"

    print("KERNEL_OK")
</pallas_src>

<mosaic_0001>
module attributes {stable_mosaic.version = 11 : i64} {
  func.func @_mhsa_kernel(%arg0: i32, %arg1: i32, %arg2: i32, %arg3: memref<1x8x32xf32, #tpu.memory_space<vmem>>, %arg4: memref<1x8x32xf32, #tpu.memory_space<vmem>>, %arg5: memref<1x8x32xf32, #tpu.memory_space<vmem>>, %arg6: memref<4x32x32xbf16, #tpu.memory_space<vmem>>, %arg7: memref<4x1x32xf32, #tpu.memory_space<vmem>>, %arg8: memref<1x8x32xf32, #tpu.memory_space<vmem>>, %arg9: memref<4x8x8xbf16, #tpu.memory_space<vmem>>, %arg10: memref<4x8x1xf32, #tpu.memory_space<vmem>>, %arg11: memref<4x8x1xf32, #tpu.memory_space<vmem>>, %arg12: memref<4x8x8xf32, #tpu.memory_space<vmem>>) attributes {dimension_semantics = [#tpu.dimension_semantics<parallel>, #tpu.dimension_semantics<parallel>, #tpu.dimension_semantics<arbitrary>], iteration_bounds = array<i64: 2, 2, 2>, scalar_prefetch = 0 : i64, scratch_operands = 4 : i64, tpu.core_type = #tpu.core_type<tc>, window_params = [{transform_indices = @transform_0, window_bounds = array<i64: 1, 8, 32>}, {transform_indices = @transform_1, window_bounds = array<i64: 1, 8, 32>}, {transform_indices = @transform_2, window_bounds = array<i64: 1, 8, 32>}, {pipeline_mode = #tpu.pipeline_mode<synchronous>, transform_indices = @transform_3, window_bounds = array<i64: 4, 32, 32>}, {pipeline_mode = #tpu.pipeline_mode<synchronous>, transform_indices = @transform_4, window_bounds = array<i64: 4, 1, 32>}, {transform_indices = @transform_5, window_bounds = array<i64: 1, 8, 32>}]} {
    %c0_i32 = arith.constant 0 : i32
    %0 = arith.cmpi eq, %arg2, %c0_i32 : i32
    %1 = arith.extui %0 : i1 to i32
    %c0_i32_0 = arith.constant 0 : i32
    %2 = arith.cmpi ne, %1, %c0_i32_0 : i32
    scf.if %2 {
      %c0_43 = arith.constant 0 : index
      %c0_44 = arith.constant 0 : index
      %c0_45 = arith.constant 0 : index
      %57 = vector.load %arg3[%c0_43, %c0_44, %c0_45] : memref<1x8x32xf32, #tpu.memory_space<vmem>>, vector<1x8x32xf32>
      %58 = vector.shape_cast %57 : vector<1x8x32xf32> to vector<8x32xf32>
      %59 = arith.truncf %58 : vector<8x32xf32> to vector<8x32xbf16>
      %c0_46 = arith.constant 0 : index
      %c0_47 = arith.constant 0 : index
      %c0_48 = arith.constant 0 : index
      %60 = vector.load %arg6[%c0_46, %c0_47, %c0_48] : memref<4x32x32xbf16, #tpu.memory_space<vmem>>, vector<1x32x32xbf16>
      %61 = vector.shape_cast %60 : vector<1x32x32xbf16> to vector<32x32xbf16>
      %cst_49 = arith.constant dense<0.000000e+00> : vector<8x32xf32>
      %62 = tpu.matmul %59, %61, %cst_49 {dimension_numbers = #tpu.dot_dimension_numbers<[1], [0], [0], [1], [0, 0, 1, 1], [], []>} : vector<8x32xbf16>, vector<32x32xbf16>, vector<8x32xf32> -> vector<8x32xf32>
      %c0_50 = arith.constant 0 : index
      %c0_51 = arith.constant 0 : index
      %c0_52 = arith.constant 0 : index
      %63 = vector.load %arg7[%c0_50, %c0_51, %c0_52] : memref<4x1x32xf32, #tpu.memory_space<vmem>>, vector<1x1x32xf32>
      %64 = vector.shape_cast %63 : vector<1x1x32xf32> to vector<1x32xf32>
      %65 = vector.broadcast %64 : vector<1x32xf32> to vector<8x32xf32>
      %66 = arith.addf %62, %65 : vector<8x32xf32>
      %67 = vector.shape_cast %66 : vector<8x32xf32> to vector<8x4x8xf32>
      %68 = tpu.transpose %67, [1, 0, 2] : vector<8x4x8xf32> -> vector<4x8x8xf32>
      %69 = arith.truncf %68 : vector<4x8x8xf32> to vector<4x8x8xbf16>
      %c0_53 = arith.constant 0 : index
      %c0_54 = arith.constant 0 : index
      %c0_55 = arith.constant 0 : index
      %70 = vector.load %arg9[%c0_53, %c0_54, %c0_55] : memref<4x8x8xbf16, #tpu.memory_space<vmem>>, vector<4x8x8xbf16>
      tpu.vector_store %arg9[%c0_53, %c0_54, %c0_55], %69 {strides = array<i32>} : memref<4x8x8xbf16, #tpu.memory_space<vmem>>, vector<4x8x8xbf16>,
      %cst_56 = arith.constant 0xFF800000 : f32
      %71 = vector.broadcast %cst_56 : f32 to vector<4x8x1xf32>
      %c0_57 = arith.constant 0 : index
      %c0_58 = arith.constant 0 : index
      %c0_59 = arith.constant 0 : index
      %72 = vector.load %arg10[%c0_57, %c0_58, %c0_59] : memref<4x8x1xf32, #tpu.memory_space<vmem>>, vector<4x8x1xf32>
      tpu.vector_store %arg10[%c0_57, %c0_58, %c0_59], %71 {strides = array<i32>} : memref<4x8x1xf32, #tpu.memory_space<vmem>>, vector<4x8x1xf32>,
      %cst_60 = arith.constant 0.000000e+00 : f32
      %73 = vector.broadcast %cst_60 : f32 to vector<4x8x1xf32>
      %c0_61 = arith.constant 0 : index
      %c0_62 = arith.constant 0 : index
      %c0_63 = arith.constant 0 : index
      %74 = vector.load %arg11[%c0_61, %c0_62, %c0_63] : memref<4x8x1xf32, #tpu.memory_space<vmem>>, vector<4x8x1xf32>
      tpu.vector_store %arg11[%c0_61, %c0_62, %c0_63], %73 {strides = array<i32>} : memref<4x8x1xf32, #tpu.memory_space<vmem>>, vector<4x8x1xf32>,
      %cst_64 = arith.constant 0.000000e+00 : f32
      %75 = vector.broadcast %cst_64 : f32 to vector<4x8x8xf32>
      %c0_65 = arith.constant 0 : index
      %c0_66 = arith.constant 0 : index
      %c0_67 = arith.constant 0 : index
      %76 = vector.load %arg12[%c0_65, %c0_66, %c0_67] : memref<4x8x8xf32, #tpu.memory_space<vmem>>, vector<4x8x8xf32>
      tpu.vector_store %arg12[%c0_65, %c0_66, %c0_67], %75 {strides = array<i32>} : memref<4x8x8xf32, #tpu.memory_space<vmem>>, vector<4x8x8xf32>,
    } else {
    }
    %c0 = arith.constant 0 : index
    %c0_1 = arith.constant 0 : index
    %c0_2 = arith.constant 0 : index
    %3 = vector.load %arg4[%c0, %c0_1, %c0_2] : memref<1x8x32xf32, #tpu.memory_space<vmem>>, vector<1x8x32xf32>
    %4 = vector.shape_cast %3 : vector<1x8x32xf32> to vector<8x32xf32>
    %5 = arith.truncf %4 : vector<8x32xf32> to vector<8x32xbf16>
    %c0_3 = arith.constant 0 : index
    %c0_4 = arith.constant 0 : index
    %c0_5 = arith.constant 0 : index
    %6 = vector.load %arg5[%c0_3, %c0_4, %c0_5] : memref<1x8x32xf32, #tpu.memory_space<vmem>>, vector<1x8x32xf32>
    %7 = vector.shape_cast %6 : vector<1x8x32xf32> to vector<8x32xf32>
    %8 = arith.truncf %7 : vector<8x32xf32> to vector<8x32xbf16>
    %c1 = arith.constant 1 : index
    %c0_6 = arith.constant 0 : index
    %c0_7 = arith.constant 0 : index
    %9 = vector.load %arg6[%c1, %c0_6, %c0_7] : memref<4x32x32xbf16, #tpu.memory_space<vmem>>, vector<1x32x32xbf16>
    %10 = vector.shape_cast %9 : vector<1x32x32xbf16> to vector<32x32xbf16>
    %cst = arith.constant dense<0.000000e+00> : vector<8x32xf32>
    %11 = tpu.matmul %5, %10, %cst {dimension_numbers = #tpu.dot_dimension_numbers<[1], [0], [0], [1], [0, 0, 1, 1], [], []>} : vector<8x32xbf16>, vector<32x32xbf16>, vector<8x32xf32> -> vector<8x32xf32>
    %c1_8 = arith.constant 1 : index
    %c0_9 = arith.constant 0 : index
    %c0_10 = arith.constant 0 : index
    %12 = vector.load %arg7[%c1_8, %c0_9, %c0_10] : memref<4x1x32xf32, #tpu.memory_space<vmem>>, vector<1x1x32xf32>
    %13 = vector.shape_cast %12 : vector<1x1x32xf32> to vector<1x32xf32>
    %14 = vector.broadcast %13 : vector<1x32xf32> to vector<8x32xf32>
    %15 = arith.addf %11, %14 : vector<8x32xf32>
    %c2 = arith.constant 2 : index
    %c0_11 = arith.constant 0 : index
    %c0_12 = arith.constant 0 : index
    %16 = vector.load %arg6[%c2, %c0_11, %c0_12] : memref<4x32x32xbf16, #tpu.memory_space<vmem>>, vector<1x32x32xbf16>
    %17 = vector.shape_cast %16 : vector<1x32x32xbf16> to vector<32x32xbf16>
    %cst_13 = arith.constant dense<0.000000e+00> : vector<8x32xf32>
    %18 = tpu.matmul %8, %17, %cst_13 {dimension_numbers = #tpu.dot_dimension_numbers<[1], [0], [0], [1], [0, 0, 1, 1], [], []>} : vector<8x32xbf16>, vector<32x32xbf16>, vector<8x32xf32> -> vector<8x32xf32>
    %c2_14 = arith.constant 2 : index
    %c0_15 = arith.constant 0 : index
    %c0_16 = arith.constant 0 : index
    %19 = vector.load %arg7[%c2_14, %c0_15, %c0_16] : memref<4x1x32xf32, #tpu.memory_space<vmem>>, vector<1x1x32xf32>
    %20 = vector.shape_cast %19 : vector<1x1x32xf32> to vector<1x32xf32>
    %21 = vector.broadcast %20 : vector<1x32xf32> to vector<8x32xf32>
    %22 = arith.addf %18, %21 : vector<8x32xf32>
    %23 = vector.shape_cast %15 : vector<8x32xf32> to vector<8x4x8xf32>
    %24 = tpu.transpose %23, [1, 0, 2] : vector<8x4x8xf32> -> vector<4x8x8xf32>
    %25 = arith.truncf %24 : vector<4x8x8xf32> to vector<4x8x8xbf16>
    %26 = vector.shape_cast %22 : vector<8x32xf32> to vector<8x4x8xf32>
    %27 = tpu.transpose %26, [1, 0, 2] : vector<8x4x8xf32> -> vector<4x8x8xf32>
    %28 = arith.truncf %27 : vector<4x8x8xf32> to vector<4x8x8xbf16>
    %c0_17 = arith.constant 0 : index
    %c0_18 = arith.constant 0 : index
    %c0_19 = arith.constant 0 : index
    %29 = vector.load %arg9[%c0_17, %c0_18, %c0_19] : memref<4x8x8xbf16, #tpu.memory_space<vmem>>, vector<4x8x8xbf16>
    "tpu.trace_start"() <{level = 10 : i32, message = "hqd,hkd->hqk"}> : () -> ()
    %cst_20 = arith.constant dense<0.000000e+00> : vector<4x8x8xf32>
    %30 = tpu.matmul %29, %25, %cst_20 {dimension_numbers = #tpu.dot_dimension_numbers<[2], [2], [1], [1], [0, 0, 0, 1, 1, 1], [0], [0]>} : vector<4x8x8xbf16>, vector<4x8x8xbf16>, vector<4x8x8xf32> -> vector<4x8x8xf32>
    "tpu.trace_stop"() : () -> ()
    %c0_21 = arith.constant 0 : index
    %c0_22 = arith.constant 0 : index
    %c0_23 = arith.constant 0 : index
    %31 = vector.load %arg10[%c0_21, %c0_22, %c0_23] : memref<4x8x1xf32, #tpu.memory_space<vmem>>, vector<4x8x1xf32>
    %cst_24 = arith.constant dense<0xFF800000> : vector<4x8xf32>
    %32 = vector.multi_reduction <maximumf>, %30, %cst_24 [2] : vector<4x8x8xf32> to vector<4x8xf32>
    %33 = vector.shape_cast %32 : vector<4x8xf32> to vector<4x8x1xf32>
    %34 = arith.maximumf %31, %33 : vector<4x8x1xf32>
    %35 = arith.subf %31, %34 : vector<4x8x1xf32>
    %36 = math.exp %35 : vector<4x8x1xf32>
    %37 = vector.broadcast %34 : vector<4x8x1xf32> to vector<4x8x8xf32>
    %38 = arith.subf %30, %37 : vector<4x8x8xf32>
    %39 = math.exp %38 : vector<4x8x8xf32>
    %c0_25 = arith.constant 0 : index
    %c0_26 = arith.constant 0 : index
    %c0_27 = arith.constant 0 : index
    %40 = vector.load %arg11[%c0_25, %c0_26, %c0_27] : memref<4x8x1xf32, #tpu.memory_space<vmem>>, vector<4x8x1xf32>
    %41 = arith.mulf %36, %40 : vector<4x8x1xf32>
    %cst_28 = arith.constant dense<0.000000e+00> : vector<4x8xf32>
    %42 = vector.multi_reduction <add>, %39, %cst_28 [2] : vector<4x8x8xf32> to vector<4x8xf32>
    %43 = vector.shape_cast %42 : vector<4x8xf32> to vector<4x8x1xf32>
    %44 = arith.addf %41, %43 : vector<4x8x1xf32>
    %c0_29 = arith.constant 0 : index
    %c0_30 = arith.constant 0 : index
    %c0_31 = arith.constant 0 : index
    %45 = vector.load %arg11[%c0_29, %c0_30, %c0_31] : memref<4x8x1xf32, #tpu.memory_space<vmem>>, vector<4x8x1xf32>
    tpu.vector_store %arg11[%c0_29, %c0_30, %c0_31], %44 {strides = array<i32>} : memref<4x8x1xf32, #tpu.memory_space<vmem>>, vector<4x8x1xf32>,
    %c0_32 = arith.constant 0 : index
    %c0_33 = arith.constant 0 : index
    %c0_34 = arith.constant 0 : index
    %46 = vector.load %arg12[%c0_32, %c0_33, %c0_34] : memref<4x8x8xf32, #tpu.memory_space<vmem>>, vector<4x8x8xf32>
    %47 = vector.broadcast %36 : vector<4x8x1xf32> to vector<4x8x8xf32>
    %48 = arith.mulf %47, %46 : vector<4x8x8xf32>
    %49 = arith.truncf %39 : vector<4x8x8xf32> to vector<4x8x8xbf16>
    "tpu.trace_start"() <{level = 10 : i32, message = "hqk,hkd->hqd"}> : () -> ()
    %cst_35 = arith.constant dense<0.000000e+00> : vector<4x8x8xf32>
    %50 = tpu.matmul %49, %28, %cst_35 {dimension_numbers = #tpu.dot_dimension_numbers<[2], [1], [1], [2], [0, 0, 0, 1, 1, 2], [0], [0]>} : vector<4x8x8xbf16>, vector<4x8x8xbf16>, vector<4x8x8xf32> -> vector<4x8x8xf32>
    "tpu.trace_stop"() : () -> ()
    %51 = arith.addf %48, %50 : vector<4x8x8xf32>
    %c0_36 = arith.constant 0 : index
    %c0_37 = arith.constant 0 : index
    %c0_38 = arith.constant 0 : index
    %52 = vector.load %arg12[%c0_36, %c0_37, %c0_38] : memref<4x8x8xf32, #tpu.memory_space<vmem>>, vector<4x8x8xf32>
    tpu.vector_store %arg12[%c0_36, %c0_37, %c0_38], %51 {strides = array<i32>} : memref<4x8x8xf32, #tpu.memory_space<vmem>>, vector<4x8x8xf32>,
    %c0_39 = arith.constant 0 : index
    %c0_40 = arith.constant 0 : index
    %c0_41 = arith.constant 0 : index
    %53 = vector.load %arg10[%c0_39, %c0_40, %c0_41] : memref<4x8x1xf32, #tpu.memory_space<vmem>>, vector<4x8x1xf32>
    tpu.vector_store %arg10[%c0_39, %c0_40, %c0_41], %34 {strides = array<i32>} : memref<4x8x1xf32, #tpu.memory_space<vmem>>, vector<4x8x1xf32>,
    %c1_i32 = arith.constant 1 : i32
    %54 = arith.cmpi eq, %arg2, %c1_i32 : i32
    %55 = arith.extui %54 : i1 to i32
    %c0_i32_42 = arith.constant 0 : i32
    %56 = arith.cmpi ne, %55, %c0_i32_42 : i32
    scf.if %56 {
      %c0_43 = arith.constant 0 : index
      %c0_44 = arith.constant 0 : index
      %c0_45 = arith.constant 0 : index
      %57 = vector.load %arg12[%c0_43, %c0_44, %c0_45] : memref<4x8x8xf32, #tpu.memory_space<vmem>>, vector<4x8x8xf32>
      %c0_46 = arith.constant 0 : index
      %c0_47 = arith.constant 0 : index
      %c0_48 = arith.constant 0 : index
      %58 = vector.load %arg11[%c0_46, %c0_47, %c0_48] : memref<4x8x1xf32, #tpu.memory_space<vmem>>, vector<4x8x1xf32>
      %59 = tpu.reciprocal %58 {approx = true} : vector<4x8x1xf32> -> vector<4x8x1xf32>
      %60 = vector.broadcast %59 : vector<4x8x1xf32> to vector<4x8x8xf32>
      %61 = arith.mulf %57, %60 : vector<4x8x8xf32>
      %62 = tpu.transpose %61, [1, 0, 2] : vector<4x8x8xf32> -> vector<8x4x8xf32>
      %63 = vector.shape_cast %62 : vector<8x4x8xf32> to vector<8x32xf32>
      %64 = arith.truncf %63 : vector<8x32xf32> to vector<8x32xbf16>
      %c3 = arith.constant 3 : index
      %c0_49 = arith.constant 0 : index
      %c0_50 = arith.constant 0 : index
      %65 = vector.load %arg6[%c3, %c0_49, %c0_50] : memref<4x32x32xbf16, #tpu.memory_space<vmem>>, vector<1x32x32xbf16>
      %66 = vector.shape_cast %65 : vector<1x32x32xbf16> to vector<32x32xbf16>
      %cst_51 = arith.constant dense<0.000000e+00> : vector<8x32xf32>
      %67 = tpu.matmul %64, %66, %cst_51 {dimension_numbers = #tpu.dot_dimension_numbers<[1], [0], [0], [1], [0, 0, 1, 1], [], []>} : vector<8x32xbf16>, vector<32x32xbf16>, vector<8x32xf32> -> vector<8x32xf32>
      %c3_52 = arith.constant 3 : index
      %c0_53 = arith.constant 0 : index
      %c0_54 = arith.constant 0 : index
      %68 = vector.load %arg7[%c3_52, %c0_53, %c0_54] : memref<4x1x32xf32, #tpu.memory_space<vmem>>, vector<1x1x32xf32>
      %69 = vector.shape_cast %68 : vector<1x1x32xf32> to vector<1x32xf32>
      %70 = vector.broadcast %69 : vector<1x32xf32> to vector<8x32xf32>
      %71 = arith.addf %67, %70 : vector<8x32xf32>
      %c0_55 = arith.constant 0 : index
      %c0_56 = arith.constant 0 : index
      %c0_57 = arith.constant 0 : index
      %72 = vector.load %arg8[%c0_55, %c0_56, %c0_57] : memref<1x8x32xf32, #tpu.memory_space<vmem>>, vector<1x8x32xf32>
      %73 = vector.shape_cast %72 : vector<1x8x32xf32> to vector<8x32xf32>
      %74 = vector.shape_cast %71 : vector<8x32xf32> to vector<1x8x32xf32>
      tpu.vector_store %arg8[%c0_55, %c0_56, %c0_57], %74 {strides = array<i32>} : memref<1x8x32xf32, #tpu.memory_space<vmem>>, vector<1x8x32xf32>,
    } else {
    }
    return
  }
  func.func @transform_0(%arg0: i32, %arg1: i32, %arg2: i32) -> (i32, i32, i32) {
    %c0_i32 = arith.constant 0 : i32
    %c0_i32_0 = arith.constant 0 : i32
    return %arg0, %arg1, %c0_i32 : i32, i32, i32
  }
  func.func @transform_1(%arg0: i32, %arg1: i32, %arg2: i32) -> (i32, i32, i32) {
    %c0_i32 = arith.constant 0 : i32
    %c0_i32_0 = arith.constant 0 : i32
    return %arg0, %arg2, %c0_i32 : i32, i32, i32
  }
  func.func @transform_2(%arg0: i32, %arg1: i32, %arg2: i32) -> (i32, i32, i32) {
    %c0_i32 = arith.constant 0 : i32
    %c0_i32_0 = arith.constant 0 : i32
    return %arg0, %arg2, %c0_i32 : i32, i32, i32
  }
  func.func @transform_3(%arg0: i32, %arg1: i32, %arg2: i32) -> (i32, i32, i32) {
    %c0_i32 = arith.constant 0 : i32
    %c0_i32_0 = arith.constant 0 : i32
    %c0_i32_1 = arith.constant 0 : i32
    %c0_i32_2 = arith.constant 0 : i32
    return %c0_i32, %c0_i32_0, %c0_i32_1 : i32, i32, i32
  }
  func.func @transform_4(%arg0: i32, %arg1: i32, %arg2: i32) -> (i32, i32, i32) {
    %c0_i32 = arith.constant 0 : i32
    %c0_i32_0 = arith.constant 0 : i32
    %c0_i32_1 = arith.constant 0 : i32
    %c0_i32_2 = arith.constant 0 : i32
    return %c0_i32, %c0_i32_0, %c0_i32_1 : i32, i32, i32
  }
  func.func @transform_5(%arg0: i32, %arg1: i32, %arg2: i32) -> (i32, i32, i32) {
    %c0_i32 = arith.constant 0 : i32
    %c0_i32_0 = arith.constant 0 : i32
    return %arg0, %arg1, %c0_i32 : i32, i32, i32
  }
}

</mosaic_0001>

<bundles_post_ra>
// kernel: tpu_custom_call.1
= control target key start
LH: loop header
LB: loop body
LE: loop exit
PB: predicated region body
PF: predicated region fallthrough
CT: control target
= control target key end

     0   :  { %s3300_s0 = inlined_call_operand.hbm [shape: f32[2,16,32], index: 0, kind: input, shape index: {}]   ;;  %s3301_s1 = inlined_call_operand.hbm [shape: f32[2,16,32], index: 1, kind: input, shape index: {}]   ;;  %s3302_s2 = inlined_call_operand.hbm [shape: f32[2,16,32], index: 2, kind: input, shape index: {}]   ;;  %s3303_s3 = inlined_call_operand.hbm [shape: bf16[4,32,32], index: 3, kind: input, shape index: {}]   ;;  %s3304_s4 = inlined_call_operand.vmem [shape: f32[4,1,32], index: 4, kind: input, shape index: {}]   ;;  %s3305_s5 = inlined_call_operand.hbm [shape: f32[2,16,32], index: 5, kind: output, shape index: {}]  }
   0x1   :  { %3335 = sst [smem:[#allocation33_spill]] %s3301_s1 }
   0x2   :  { %3336 = sst [smem:[#allocation34_spill]] %s3303_s3 }
   0x3   :  { %3337 = sst [smem:[#allocation35_spill]] %s3304_s4 }
   0x4   :  { %3338 = sst [smem:[#allocation36_spill]] %s3305_s5 }
   0x5   :  { %10 = vsyncpa [#allocation7], 0 }
   0x6   :  { %12 = vsyncpa [#allocation7 + $0x1], 0 }
   0x7   :  { %13 = vsyncpa [#allocation10], 0 }
   0x8   :  { %15 = vsyncpa [#allocation10 + $0x1], 0 }
   0x9   :  { %16 = vsyncpa [#allocation13], 0 }
   0xa   :  { %17 = vsyncpa [#allocation8], 0 }
   0xb   :  { %19 = vsyncpa [#allocation8 + $0x1], 0  ;;  %s2675_s18 = smov 0   ;;  %s2677_s19 = smov 0  }
   0xc   :  { %s2679_s20 = smov 0   ;;  %s2681_s21 = smov 0  }
   0xd   :  { %s2683_s22 = smov 0   ;;  %s2685_s23 = smov 0  }
   0xe   :  { %s2687_s24 = smov 0   ;;  %s2689_s25 = smov 0  }
   0xf   :  { %s2691_s26 = smov 0   ;;  %s2693_s27 = smov 0  }
  0x10   :  { %s2695_s28 = smov 0   ;;  %s2697_s29 = smov 0  }
  0x11   :  { %s2699_s30 = smov 0  }
  0x12 LB: > { %3339 = sst [smem:[#allocation19_spill]] %s2570_s19  ;;  %s37_s6 = sadd.s32 1, %s2602_s27  ;;  %s2614_s30 = sphi %s2699_s30, %s25_s30   ;;  %s2610_s29 = sphi %s2697_s29, %s3416_s29   ;;  %s2606_s28 = sphi %s2695_s28, %s3415_s28   ;;  %s2602_s27 = sphi %s2693_s27, %s3414_s27   ;;  %s2598_s26 = sphi %s2691_s26, %s3413_s26   ;;  %s2594_s25 = sphi %s2689_s25, %s3405_s25   ;;  %s2590_s24 = sphi %s2687_s24, %s3412_s24   ;;  %s2586_s23 = sphi %s2685_s23, %s3411_s23   ;;  %s2582_s22 = sphi %s2683_s22, %s3410_s22   ;;  %s2578_s21 = sphi %s2681_s21, %s3404_s21   ;;  %s2574_s20 = sphi %s2679_s20, %s3409_s20   ;;  %s2570_s19 = sphi %s2677_s19, %s3408_s19   ;;  %s2566_s18 = sphi %s2675_s18, %s3403_s18  }
  0x13   : > { %3340 = sst [smem:[#allocation20_spill]] %s2578_s21  ;;  %p2741_p0 = scmp.ge.s32.totalorder %s37_s6, 2 }
  0x14   : > { %3341 = sst [smem:[#allocation21_spill]] %s2582_s22  ;;  %p3310_p1 = scmp.eq.s32.totalorder %s2614_s30, 0 }
  0x15   : > { %3342 = sst [smem:[#allocation22_spill]] %s2590_s24  ;;  %p88_p2 = scmp.ne.s32.totalorder %s2574_s20, %s2570_s19 }
  0x16   : > { %3343 = sst [smem:[#allocation23_spill]] %s2594_s25  ;;  %s3418_s6 = smov (%p2741_p0, %s37_s6), 0 }
  0x17   : > { %3344 = sst [smem:[#allocation24_spill]] %s2598_s26  ;;  %p2756_p3 = por %p88_p2, %p3310_p1 }
  0x18   : > { %3345 = sst [smem:[#allocation25_spill]] %s2606_s28  ;;  %s3307_s12 = sshll.u32 %s2610_s29, 1 }
  0x19   : > { %s3346_s7 = scalar_select %p2741_p0, 1, 0 }
  0x1a   : > { %p3309_p5 = scmp.lt.s32.totalorder %s2614_s30, 8  ;;  %s254_s13 = sand.u32 1, %s2574_s20  }
  0x1b   : > { %s252_s14 = sand.u32 1, %s2614_s30   ;;  %s2768_s15 = sshll.u32 %s254_s13, 3 }
  0x1c   : > { %s2773_s16 = sadd.s32 %s2602_s27, %s3307_s12  ;;  %s256_s9 = scalar_lea.vmem [#allocation9], %s2768_s15 }
  0x1d   : > { %s3308_s17 = sshll.u32 %s2773_s16, 7  ;;  %s265_s8 = sshll.u32 %s256_s9, 4  ;;  %s2784_s8 = int_to_ptr.vmem [resolvable:$true] %s265_s8 }
  0x1e   : > { %s3348_s1 = sld [smem:[#allocation33_spill]]  ;;  %p2790_p6 = pnand %p3309_p5, %p2756_p3 }
  0x1f   : > { %s2794_s9 = scalar_lea.sflag [#allocation10], %s252_s14 }
  0x20   : > { %s3349_s13 = scalar_select %p2790_p6, 1, 0 }
  0x21   : > { %p3312_p8 = pneg %p2790_p6 }
  0x24   : > { %s2782_s11 = scalar_lea.hbm %s3348_s1, %s3308_s17  ;;  %s2355_s10 = scalar_lea.hbm %s3348_s1, 512 }
  0x25   : > { %s2350_s12 = scalar_lea.hbm %s2782_s11, 128  ;;  %p2356_p11 = scmp.lt.u32.totalorder %s2782_s11, %s3348_s1 }
  0x26   : > { %p2351_p7 = scmp.ne.s32.totalorder %s2782_s11, %s2350_s12  ;;  %p2357_p12 = scmp.lt.u32.totalorder %s2355_s10, %s2350_s12 }
  0x27   : > { %p2359_p2 = scmp.lt.u32.totalorder %s2350_s12, %s2782_s11 }
  0x28   : > { %p2353_p9 = pnand %p3312_p8, %p2351_p7  ;;  %p2358_p13 = por %p2357_p12, %p2356_p11 }
  0x2a   : > { %p2354_p10 = pneg %p2353_p9  ;;  %p2360_p3 = por %p2359_p2, %p2358_p13 }
  0x2c   : > { %p2361_p5 = pnand %p2360_p3, %p2354_p10 }
  0x2e   : > { %2364 = shalt.err (!%p2361_p5)
}
  0x2f   : > { %s2365_s14 = scalar_lea.vmem %s2784_s8, 128  ;;  %s2616_s5 = smov [#allocation9]  }
  0x30   : > { %p2366_p7 = scmp.ne.s32.totalorder %s2784_s8, %s2365_s14  ;;  %s2370_s25 = sshll.u32 %s2616_s5, 4  ;;  %s2371_s25 = int_to_ptr.vmem [resolvable:$false] %s2370_s25 }
  0x31   : > { %s2372_s26 = scalar_lea.vmem %s2371_s25, 256  ;;  %p2373_p4 = scmp.lt.s32.totalorder %s2784_s8, %s2371_s25 }
  0x32   : > { %p2368_p9 = pnand %p2366_p7, %p3312_p8  ;;  %p2374_p11 = scmp.lt.s32.totalorder %s2372_s26, %s2365_s14 }
  0x34   : > { %p2369_p1 = pneg %p2368_p9  ;;  %p2375_p12 = por %p2374_p11, %p2373_p4 }
  0x36   : > { %p2376_p13 = pnand %p2375_p12, %p2369_p1 }
  0x38   : > { %2379 = shalt.err (!%p2376_p13)
}
  0x39   : > { %2173 = dma.hbm_to_vmem [thread:$0]  (!%p2790_p6), %s2782_s11, 128, %s2784_s8, %s2794_s9  }
  0x3a   : > { %s2823_s12 = sadd.s32 4294967295, %s2614_s30   ;;  %p1983_p5 = scmp.ge.s32.totalorder %s2614_s30, 1 }
  0x3b   : > { %3350 = sst [smem:[#allocation26_spill]] %s2823_s12  ;;  %p3313_p4 = scmp.eq.s32.totalorder %s2823_s12, 0 }
  0x3c   : > { %p203_p1 = scmp.lt.s32.totalorder %s2614_s30, 9  ;;  %p3351_p10 = scmp.ne.s32.totalorder %s2570_s19, %s2566_s18 }
  0x3d   : > { %s2617_s8 = smov [#allocation12]   ;;  %s3357_s3 = sld [smem:[#allocation34_spill]] }
  0x3e   : > { %p2833_p2 = por %p3351_p10, %p3313_p4  ;;  %p2837_p3 = pnand %p1983_p5, %p203_p1 }
  0x3f   : > { %s215_s11 = sshll.u32 %s2617_s8, 4  ;;  %s216_s11 = int_to_ptr.vmem [resolvable:$true] %s215_s11 }
  0x40   : > { %s3352_s17 = scalar_select %p2833_p2, 1, 0 }
  0x41   : > { %s3354_s10 = scalar_select %p2837_p3, 1, 0 }
  0x42   : > { %3353 = sst [smem:[#allocation27_spill]] %s3352_s17  ;;  %p2163_p7 = pneg %p2837_p3 }
  0x43   : > { %3355 = sst [smem:[#allocation28_spill]] %s3354_s10  ;;  %s2380_s25 = scalar_lea.hbm %s3357_s3, 1024 }
  0x44   : > { %p2845_p9 = pnand %p2163_p7, %p3313_p4  ;;  %p2381_p11 = scmp.ne.s32.totalorder %s3357_s3, %s2380_s25 }
  0x45   : > { %p2387_p1 = scmp.lt.u32.totalorder %s2380_s25, %s3357_s3 }
  0x46   : > { %p2382_p12 = pneg %p2845_p9 }
  0x48   : > { %p2383_p13 = pnand %p2382_p12, %p2381_p11 }
  0x4a   : > { %p2384_p5 = pneg %p2383_p13 }
  0x4c   : > { %p2389_p10 = pnand %p2387_p1, %p2384_p5 }
  0x4e   : > { %2392 = shalt.err (!%p2389_p10)
}
  0x4f   : > { %s2393_s24 = scalar_lea.vmem %s216_s11, 1024  ;;  %p2401_p2 = scmp.lt.s32.totalorder %s216_s11, %s216_s11 }
  0x50   : > { %p2394_p7 = scmp.ne.s32.totalorder %s216_s11, %s2393_s24  ;;  %p2402_p3 = scmp.lt.s32.totalorder %s2393_s24, %s2393_s24 }
  0x52   : > { %p2396_p8 = pnand %p2394_p7, %p2382_p12  ;;  %p2403_p6 = por %p2402_p3, %p2401_p2 }
  0x54   : > { %p2397_p4 = pneg %p2396_p8 }
  0x56   : > { %p2404_p0 = pnand %p2403_p6, %p2397_p4 }
  0x58   : > { %2407 = shalt.err (!%p2404_p0)
}
  0x59   : > { %s2618_s1 = smov 64   ;;  %s2619_s4 = smov 4  }
  0x5a   : > { %2166 = dma.hbm_to_vmem [thread:$0]  (!%p2845_p9), %s3357_s3, 1024, %s216_s11, [#allocation13], %s2618_s1, %s2618_s1, %s2619_s4  }
  0x5b   : > { %s1982_s5 = sadd.s32 4294967294, %s2614_s30   ;;  %s40_s25 = sadd.s32 1, %s2606_s28 }
  0x5c   : > { %s53_s26 = sadd.s32 1, %s2586_s23  ;;  %p3358_p0 = scmp.ne.s32.totalorder %s3346_s7, 0 }
  0x5d   : > { %p60_p6 = scmp.ne.s32.totalorder %s2586_s23, %s2582_s22  ;;  %p66_p8 = scmp.ne.s32.totalorder %s2582_s22, %s2578_s21 }
  0x5e   : > { %s3420_s25 = smov (!%p3358_p0, %s40_s25), %s2606_s28  ;;  %p190_p2 = scmp.eq.s32.totalorder %s2823_s12, 7 }
  0x5f   : > { %p42_p4 = scmp.ge.s32.totalorder %s3420_s25, 2  ;;  %p3359_p3 = scmp.eq.s32.totalorder %s2614_s30, 0 }
  0x60   : > { %p3361_p9 = scmp.eq.s32.totalorder %s2823_s12, 0  ;;  %s3365_s7 = sadd.s32 1, %s2610_s29 }
  0x61   : > { %p2878_p11 = por %p3359_p3, %p60_p6  ;;  %s3422_s25 = smov (%p42_p4, %s3420_s25), 0 }
  0x62   : > { %p2887_p12 = por %p3361_p9, %p66_p8  ;;  %3364 = sst [smem:[#allocation30_spill]] %s3422_s25 }
  0x63   : > { %s3424_s7 = smov (!%p42_p4, %s3365_s7), %s2610_s29  ;;  %s49_s8 = ssub.s32 %s2606_s28, %s3422_s25 }
  0x64   : > { %s3362_s14 = scalar_select %p2887_p12, 1, 0 }
  0x65   : > { %p2898_p13 = por %p190_p2, %p60_p6  ;;  %p46_p5 = scmp.ge.s32.totalorder %s3424_s7, 2 }
  0x66   : > { %3363 = sst [smem:[#allocation29_spill]] %s3362_s14  ;;  %p196_p1 = scmp.eq.s32.totalorder %s1982_s5, 7 }
  0x67   : > { %s3366_s1 = scalar_select %p2898_p13, 1, 0 }
  0x68   : > { %s232_s4 = sand.u32 1, %s2586_s23   ;;  %s3368_s24 = sshll.u32 %s2610_s29, 1 }
  0x69   : > { %3367 = sst [smem:[#allocation31_spill]] %s3366_s1  ;;  %s241_s18 = sadd.s32 %s2606_s28, %s3368_s24 }
  0x6a   : > { %s3426_s7 = smov (%p46_p5, %s3424_s7), 0  ;;  %p2911_p10 = por %p196_p1, %p66_p8 }
  0x6b   : > { %3369 = sst [smem:[#allocation32_spill]] %s3426_s7  ;;  %s48_s25 = ssub.s32 %s2610_s29, %s3426_s7 }
  0x6c   : > { %s3370_s3 = scalar_select %p2911_p10, 1, 0 }
  0x6d   : > { %s1986_s17 = sshll.u32 %s232_s4, 3  ;;  %s50_s1 = sor.u32 %s49_s8, %s48_s25 }
  0x6e   : > { %s3371_s19 = ssub.s32 %s2602_s27, %s3418_s6  ;;  %p51_p7 = scmp.eq.s32.totalorder %s50_s1, 0 }
  0x6f   : > { %s78_s5 = sor.u32 %s3371_s19, %s48_s25  ;;  %s1988_s24 = sshll.u32 %s241_s18, 7 }
  0x70   : > { %p79_p0 = scmp.eq.s32.totalorder %s78_s5, 0  ;;  %s3372_s12 = sadd.s32 1, %s2574_s20 }
  0x71   : > { %s2921_s28 = scalar_select %p51_p7, %s2586_s23, %s53_s26  }
  0x72   : > { %s2926_s14 = scalar_select %p79_p0, %s2574_s20, %s3372_s12  }
  0x73   : > { %s2931_s10 = scalar_lea.hbm %s3300_s0, %s1988_s24  ;;  %s236_s7 = scalar_lea.vmem [#allocation6], %s1986_s17 }
  0x74   : > { %s245_s8 = sshll.u32 %s236_s7, 4  ;;  %p3373_p6 = scmp.lt.s32.totalorder %s2614_s30, 8  ;;  %s2933_s8 = int_to_ptr.vmem [resolvable:$true] %s245_s8 }
  0x75   : > { %s3375_s12 = sshll.u32 %s2773_s16, 7  ;;  %s276_s22 = scalar_lea.vmem [#allocation11], %s2768_s15 }
  0x76   : > { %p2939_p8 = pnand %p3373_p6, %p2878_p11  ;;  %s2948_s21 = scalar_lea.hbm %s3302_s2, %s3375_s12 }
  0x77   : > { %s285_s17 = sshll.u32 %s276_s22, 4  ;;  %s233_s7 = scalar_lea.sflag [#allocation7], %s232_s4  ;;  %s2951_s17 = int_to_ptr.vmem [resolvable:$true] %s285_s17 }
  0x78   : > { %s2408_s11 = scalar_lea.hbm %s2931_s10, 128  ;;  %p2410_p2 = pneg %p2939_p8 }
  0x79   : > { %p2409_p4 = scmp.ne.s32.totalorder %s2931_s10, %s2408_s11  ;;  %s2413_s18 = scalar_lea.hbm %s3300_s0, 512 }
  0x7a   : > { %p2414_p9 = scmp.lt.u32.totalorder %s2931_s10, %s3300_s0  ;;  %p2415_p5 = scmp.lt.u32.totalorder %s2413_s18, %s2408_s11 }
  0x7b   : > { %p2411_p3 = pnand %p2410_p2, %p2409_p4  ;;  %p2417_p7 = scmp.lt.u32.totalorder %s2408_s11, %s2931_s10 }
  0x7c   : > { %p2416_p1 = por %p2415_p5, %p2414_p9 }
  0x7d   : > { %p2412_p11 = pneg %p2411_p3 }
  0x7e   : > { %p2418_p0 = por %p2417_p7, %p2416_p1 }
  0x80   : > { %p2419_p6 = pnand %p2418_p0, %p2412_p11 }
  0x82   : > { %2422 = shalt.err (!%p2419_p6)
}
  0x83   : > { %s2423_s15 = scalar_lea.vmem %s2933_s8, 128  ;;  %s2620_s4 = smov [#allocation6]  }
  0x84   : > { %p2424_p4 = scmp.ne.s32.totalorder %s2933_s8, %s2423_s15  ;;  %s2428_s12 = sshll.u32 %s2620_s4, 4  ;;  %s2429_s12 = int_to_ptr.vmem [resolvable:$false] %s2428_s12 }
  0x85   : > { %s2430_s25 = scalar_lea.vmem %s2429_s12, 256  ;;  %p2431_p13 = scmp.lt.s32.totalorder %s2933_s8, %s2429_s12 }
  0x86   : > { %p2426_p3 = pnand %p2424_p4, %p2410_p2  ;;  %p2432_p9 = scmp.lt.s32.totalorder %s2430_s25, %s2423_s15 }
  0x88   : > { %p2427_p10 = pneg %p2426_p3  ;;  %p2433_p5 = por %p2432_p9, %p2431_p13 }
  0x8a   : > { %p2434_p1 = pnand %p2433_p5, %p2427_p10 }
  0x8c   : > { %2437 = shalt.err (!%p2434_p1)
}
  0x8d   : > { %2170 = dma.hbm_to_vmem [thread:$0]  (!%p2939_p8), %s2931_s10, 128, %s2933_s8, %s233_s7  }
  0x8e   : > { %s2438_s26 = scalar_lea.hbm %s2948_s21, 128  ;;  %p3376_p11 = scmp.ne.s32.totalorder %s3349_s13, 0 }
  0x8f   : > { %p2439_p2 = scmp.ne.s32.totalorder %s2948_s21, %s2438_s26  ;;  %s2443_s16 = scalar_lea.hbm %s3302_s2, 512 }
  0x90   : > { %p3377_p7 = pneg %p3376_p11  ;;  %p2444_p13 = scmp.lt.u32.totalorder %s2948_s21, %s3302_s2 }
  0x91   : > { %p2445_p10 = scmp.lt.u32.totalorder %s2443_s16, %s2438_s26  ;;  %p2447_p3 = scmp.lt.u32.totalorder %s2438_s26, %s2948_s21 }
  0x92   : > { %p2441_p0 = pnand %p2439_p2, %p3377_p7 }
  0x93   : > { %p2446_p4 = por %p2445_p10, %p2444_p13 }
  0x94   : > { %p2442_p6 = pneg %p2441_p0 }
  0x95   : > { %p2448_p9 = por %p2447_p3, %p2446_p4 }
  0x97   : > { %p2449_p5 = pnand %p2448_p9, %p2442_p6 }
  0x99   : > { %2452 = shalt.err (!%p2449_p5)
}
  0x9a   : > { %s2453_s10 = scalar_lea.vmem %s2951_s17, 128  ;;  %p3378_p1 = pmov %p3377_p7 }
  0x9b   : > { %p2454_p8 = scmp.ne.s32.totalorder %s2951_s17, %s2453_s10  ;;  %s2621_s8 = smov [#allocation11]  }
  0x9c   : > { %s2458_s7 = sshll.u32 %s2621_s8, 4  ;;  %s2459_s7 = int_to_ptr.vmem [resolvable:$false] %s2458_s7 }
  0x9d   : > { %p2456_p2 = pnand %p2454_p8, %p3378_p1  ;;  %s2460_s18 = scalar_lea.vmem %s2459_s7, 256 }
  0x9e   : > { %p2461_p0 = scmp.lt.s32.totalorder %s2951_s17, %s2459_s7  ;;  %p2462_p13 = scmp.lt.s32.totalorder %s2460_s18, %s2453_s10 }
  0x9f   : > { %p2457_p7 = pneg %p2456_p2 }
  0xa0   : > { %p2463_p10 = por %p2462_p13, %p2461_p0 }
  0xa2   : > { %p2464_p4 = pnand %p2463_p10, %p2457_p7 }
  0xa4   : > { %2467 = shalt.err (!%p2464_p4)
}
  0xa5   : > { %2176 = dma.hbm_to_vmem [thread:$0]  (!%p3376_p11), %s2948_s21, 128, %s2951_s17, %s2794_s9  }
  0xa6   : > { %s3379_s5 = sld [smem:[#allocation28_spill]] }
  0xac   : > { %p3380_p6 = scmp.ne.s32.totalorder %s3379_s5, 0 }
  0xad   : > { %s3381_s24 = sld [smem:[#allocation21_spill]] (!%p3380_p6) }
  0xae   : > { %294 = sbr.rel (%p3380_p6) target bundleno = 2128 (0x850), region = 40 }
  0xb3   : > { %s3005_s4 = sand.u32 (!%p3380_p6), 1, %s3381_s24  }
  0xb4   : > { %s1996_s12 = sshll.u32 (!%p3380_p6), %s3005_s4, 3  ;;  %s297_s25 = scalar_lea.sflag (!%p3380_p6), [#allocation7], %s3005_s4 }
  0xb5   : > { %s3009_s26 = scalar_lea.vmem [#allocation6], %s1996_s12 }
  0xb6   : > { %2549 = dma.done.wait (%p2887_p12), %s297_s25, 128  }
  0xb7   : > { %2551 = vsyncadd (%p2887_p12), %s297_s25, 4294967168  ;;  %s3383_s13 = sld [smem:[#allocation26_spill]]  ;;  %s3384_s9 = sld [smem:[#allocation19_spill]] }
  0xb8   : > { %s3385_s21 = sld [smem:[#allocation27_spill]] }
  0xbd   : > { %s305_s17 = sand.u32 1, %s3383_s13   ;;  %s307_s22 = sand.u32 1, %s3384_s9  }
  0xbe   : > { %s3017_s11 = sshll.u32 %s307_s22, 3  ;;  %s306_s16 = scalar_lea.sflag [#allocation10], %s305_s17 }
  0xbf   : > { %s309_s1 = scalar_lea.vmem [#allocation9], %s3017_s11  ;;  %p3386_p11 = scmp.ne.s32.totalorder %s3385_s21, 0 }
  0xc1   : > { %2553 = dma.done.wait (%p3386_p11), %s306_s16, 256  }
  0xc2   : > { %2555 = vsyncadd (%p3386_p11), %s306_s16, 4294967040  ;;  %s318_s19 = scalar_lea.vmem [#allocation11], %s3017_s11  ;;  %p3387_p3 = scmp.eq.s32.totalorder %s3383_s13, 0 }
  0xc4   : > { %2557 = dma.done.wait (%p3387_p3), [#allocation13], 1024   ;;  %p3388_p12 = pmov %p3387_p3 }
  0xc5   : > { %s3029_s10 = scalar_lea.vmem [#allocation14], %s1996_s12  ;;  %s3389_s8 = sld [smem:[#allocation22_spill]] }
  0xc6   : > { %2559 = vsyncadd (%p3388_p12), [#allocation13], 4294966272 }
  0xcb   : > { %p2001_p9 = scmp.ne.s32.totalorder %s3389_s8, 0 }
  0xcc   : > { %vm588_vm0 = vcmask (!%p2001_p9), 7168   ;;  %vm597_vm1 = vcmask (!%p2001_p9), 64512   ;;  %v2622_v0 = vmov (!%p2001_p9), 0.0   ;;  %v2623_v1 = vmov (!%p2001_p9), -inf   ;;  %v2314_v2 = vld [vmem:[#allocation12] sm:$0xff] (!%p2001_p9)   ;;  %v2315_v3 = vld [vmem:[#allocation12 + $0x8] sm:$0xff] (!%p2001_p9)  }
  0xcd   : > { %363 = sbr.rel (%p2001_p9) target bundleno = 568 (0x238), region = 60  ;;  %2071 = vmatprep.subr.bf16.mxu0 (!%p2001_p9), %v2622_v0  ;;  %589 = vst.msk [vmem:[#allocation3] sm:$0xff] (!%p2001_p9), %vm588_vm0, %v2623_v1  ;;  %590 = vst.msk [vmem:[#allocation3 + $0x8] sm:$0xff] (!%p2001_p9), %vm588_vm0, %v2623_v1  ;;  %vm2624_vm2 = vmmov (!%p2001_p9), 0   ;;  %v364_v4 = vld [vmem:[%s3009_s26] sm:$0xff] (!%p2001_p9)  ;;  %vm389_vm3 = vcmask (!%p2001_p9), 261120   ;;  %v448_v14 = vlaneseq (!%p2001_p9) }
  0xce   : > { %591 = vst.msk [vmem:[#allocation3 + $0x10] sm:$0xff] (!%p2001_p9), %vm588_vm0, %v2623_v1  ;;  %592 = vst.msk [vmem:[#allocation3 + $0x18] sm:$0xff] (!%p2001_p9), %vm588_vm0, %v2623_v1  ;;  %2075 = vmatprep.mubr.msk.bf16.mxu0 (!%p2001_p9), %vm2624_vm2, %v2622_v0  ;;  %2072 = vmatpush3.bf16.msra.mxu0 (!%p2001_p9), %v2314_v2  ;;  %v365_v5 = vpack.c.bf16 (!%p2001_p9), %v364_v4, %v364_v4  ;;  %s3390_s5 = sld [smem:[#allocation35_spill]] (!%p2001_p9)  ;;  %s2625_s24 = smov (!%p2001_p9), 104   ;;  %v2628_v12 = vmov (!%p2001_p9), 1983009808  }
  0xcf   : > { %593 = vst.msk [vmem:[#allocation4] sm:$0xff] (!%p2001_p9), %vm588_vm0, %v2622_v0  ;;  %594 = vst.msk [vmem:[#allocation4 + $0x8] sm:$0xff] (!%p2001_p9), %vm588_vm0, %v2622_v0  ;;  %2073 = vmatprep.subr.bf16.mxu0 (!%p2001_p9), %v2622_v0  ;;  %s2626_s15 = smov (!%p2001_p9), 120   ;;  %s2627_s12 = smov (!%p2001_p9), 112   ;;  %v446_v13 = vunpack.c.l.s4 (!%p2001_p9), %v2628_v12  ;;  %v2629_v15 = vmov (!%p2001_p9), 1934713408  }
  0xd0   : > { %595 = vst.msk [vmem:[#allocation4 + $0x10] sm:$0xff] (!%p2001_p9), %vm588_vm0, %v2622_v0  ;;  %596 = vst.msk [vmem:[#allocation4 + $0x18] sm:$0xff] (!%p2001_p9), %vm588_vm0, %v2622_v0  ;;  %v478_v16 = vunpack.c.l.s4 (!%p2001_p9), %v2629_v15  ;;  %v449_v18 = vshrl.u32 (!%p2001_p9), %v448_v14, 7  ;;  %vm583_vm4 = vcmask (!%p2001_p9), 60416  }
  0xd1   : > { %598 = vst.msk [vmem:[#allocation5] sm:$0xff] (!%p2001_p9), %vm597_vm1, %v2622_v0  ;;  %599 = vst.msk [vmem:[#allocation5 + $0x8] sm:$0xff] (!%p2001_p9), %vm597_vm1, %v2622_v0  ;;  %v447_v17 = vunpack.c.0.s8 (!%p2001_p9), %v446_v13 }
  0xd2   : > { %600 = vst.msk [vmem:[#allocation5 + $0x10] sm:$0xff] (!%p2001_p9), %vm597_vm1, %v2622_v0  ;;  %601 = vst.msk [vmem:[#allocation5 + $0x18] sm:$0xff] (!%p2001_p9), %vm597_vm1, %v2622_v0  ;;  %2074 = vmatpush3.bf16.msra.mxu0 (!%p2001_p9), %v2315_v3  ;;  %v479_v21 = vunpack.c.0.s8 (!%p2001_p9), %v478_v16 }
  0xd3   : > { %v450_v22 = vsub.s32 (!%p2001_p9), %v447_v17, %v449_v18 }
  0xd4   : > { %v2002_v6 = vld [vmem:[%s3390_s5] ss:$0 sm:$0xff]  ;;  %v482_v28 = vsub.s32 %v479_v21, %v449_v18 }
  0xd5   : > { %2076 = vmatmul.mubr.msk.bf16.vlgmr.msra.gmra.mrb[0].mxu0 %vm389_vm3, %v365_v5 }
 0x1a8   : > { %v427_v7 = vpop.f32.mrb[0].mxu0 }
 0x1a9   : > { %v428_v8 = vadd.f32 %v2002_v6, %v427_v7  ;;  %v2077_v9 = vpop.f32.mrb[1].mxu0 }
 0x1aa   : > { %v430_v10 = vpop.f32.mrb[2].mxu0 }
 0x1ab   : > { %440 = vrot.lane.b32.xlu1 %v428_v8, %s2625_s24  ;;  %434 = vrot.lane.b32.xlu0 %v428_v8, %s2626_s15  ;;  %v2078_v11 = vpop.f32.mrb[3].mxu0 }
 0x1af   : > { %437 = vrot.lane.b32.xlu0 %v428_v8, %s2627_s12 }
 0x21d   : > { %v441_v19 = vpop.permute.xlu1 %440  ;;  %v435_v20 = vpop.permute.xlu0 %434 }
 0x21e   : > { %v459_v23 = vcombine.low %v435_v20, %v441_v19  ;;  %v460_v24 = vcombine.high %v435_v20, %v441_v19 }
 0x220   : > { %v467_v29 = vrot.slane %v459_v23, %v450_v22  ;;  %v474_v30 = vrot.slane %v460_v24, %v450_v22 }
 0x221   : > { %v438_v25 = vpop.permute.xlu0 %437 }
 0x222   : > { %v443_v26 = vcombine.low %v428_v8, %v438_v25  ;;  %v444_v27 = vcombine.high %v428_v8, %v438_v25 }
 0x224   : > { %v451_v31 = vrot.slane %v443_v26, %v450_v22  ;;  %v458_v32 = vrot.slane %v444_v27, %v450_v22 }
 0x226   : > { %v475_v33 = vcombine.low %v451_v31, %v467_v29  ;;  %v476_v34 = vcombine.high %v451_v31, %v467_v29  ;;  %v491_v35 = vcombine.low %v458_v32, %v474_v30  ;;  %v492_v36 = vcombine.high %v458_v32, %v474_v30 }
 0x228   : > { %v483_v37 = vrot.slane %v475_v33, %v482_v28  ;;  %v490_v38 = vrot.slane %v476_v34, %v482_v28  ;;  %v499_v39 = vrot.slane %v491_v35, %v482_v28  ;;  %v506_v40 = vrot.slane %v492_v36, %v482_v28 }
 0x22a   : > { %v511_v41 = vcombine.low %v483_v37, %v490_v38  ;;  %v2006_v42 = vcombine.high %v483_v37, %v490_v38  ;;  %v527_v43 = vcombine.low %v499_v39, %v506_v40  ;;  %v2007_v44 = vcombine.high %v499_v39, %v506_v40 }
 0x22c   : > { %v518_v45 = vrot.slane %v511_v41, %v450_v22  ;;  %v526_v46 = vrot.slane %v2006_v42, %v450_v22  ;;  %v534_v47 = vrot.slane %v527_v43, %v450_v22  ;;  %v542_v48 = vrot.slane %v2007_v44, %v450_v22 }
 0x22e   : > { %v543_v49 = vcombine.low %v518_v45, %v526_v46  ;;  %v544_v50 = vcombine.high %v518_v45, %v526_v46  ;;  %v559_v51 = vcombine.low %v534_v47, %v542_v48  ;;  %v560_v52 = vcombine.high %v534_v47, %v542_v48 }
 0x230   : > { %v551_v53 = vrot.slane %v543_v49, %v482_v28  ;;  %v558_v54 = vrot.slane %v544_v50, %v482_v28  ;;  %v567_v55 = vrot.slane %v559_v51, %v482_v28  ;;  %v574_v56 = vrot.slane %v560_v52, %v482_v28 }
 0x232   : > { %v575_v57 = vcombine.low %v551_v53, %v567_v55  ;;  %v576_v58 = vcombine.high %v551_v53, %v567_v55  ;;  %v577_v59 = vcombine.low %v558_v54, %v574_v56  ;;  %v578_v60 = vcombine.high %v558_v54, %v574_v56 }
 0x234   : > { %v579_v61 = vpack.c.bf16 %v575_v57, %v575_v57  ;;  %v580_v62 = vpack.c.bf16 %v576_v58, %v576_v58  ;;  %v581_v63 = vpack.c.bf16 %v577_v59, %v577_v59  ;;  %v582_v0 = vpack.c.bf16 %v578_v60, %v578_v60 }
 0x236   : > { %584 = vst.msk [vmem:[#allocation2] sm:$0xf] %vm583_vm4, %v579_v61  ;;  %585 = vst.msk [vmem:[#allocation2 + $0x4] sm:$0xf] %vm583_vm4, %v580_v62 }
 0x237   : > { %586 = vst.msk [vmem:[#allocation2 + $0x8] sm:$0xf] %vm583_vm4, %v581_v63  ;;  %587 = vst.msk [vmem:[#allocation2 + $0xc] sm:$0xf] %vm583_vm4, %v582_v0 }
 0x238 PF: > { %v2318_v1 = vld [vmem:[#allocation12 + $0x10] sm:$0xff]   ;;  %v2630_v2 = vmov 0.0   ;;  %v2319_v3 = vld [vmem:[#allocation12 + $0x18] sm:$0xff]   ;;  %vm2631_vm5 = vmmov 0   ;;  %v602_v4 = vld [vmem:[%s309_s1] sm:$0xff]  ;;  %vm631_vm6 = vcmask 261120   ;;  %v758_v18 = vlaneseq }
 0x239   : > { %2079 = vmatprep.subr.bf16.mxu0 %v2630_v2  ;;  %2087 = vmatprep.subr.bf16.mxu1 %v2630_v2  ;;  %v603_v5 = vpack.c.bf16 %v602_v4, %v602_v4  ;;  %s3391_s13 = sld [smem:[#allocation35_spill]]  ;;  %v2320_v8 = vld [vmem:[#allocation12 + $0x20] sm:$0xff]   ;;  %s2632_s9 = smov 104   ;;  %v2321_v13 = vld [vmem:[#allocation12 + $0x28] sm:$0xff]   ;;  %v604_v14 = vld [vmem:[%s318_s19] sm:$0xff]  ;;  %vm1047_vm7 = vcmask 64512  }
 0x23a   : > { %2080 = vmatpush3.bf16.msra.mxu0 %v2318_v1  ;;  %2083 = vmatprep.mubr.msk.bf16.mxu0 %vm2631_vm5, %v2630_v2  ;;  %s2633_s21 = smov 120   ;;  %v605_v15 = vpack.c.bf16 %v604_v14, %v604_v14  ;;  %s2634_s17 = smov 112   ;;  %v2635_v16 = vmov 1983009808   ;;  %v2636_v19 = vmov 1934713408  }
 0x23b   : > { %2081 = vmatprep.subr.bf16.mxu0 %v2630_v2  ;;  %2091 = vmatprep.mubr.msk.bf16.mxu1 %vm2631_vm5, %v2630_v2  ;;  %v756_v17 = vunpack.c.l.s4 %v2635_v16  ;;  %v788_v20 = vunpack.c.l.s4 %v2636_v19  ;;  %v759_v22 = vshrl.u32 %v758_v18, 7  ;;  %vm1320_vm8 = vcmask 7168   ;;  %s3392_s16 = sld [smem:[#allocation22_spill]] }
 0x23c   : > { %2088 = vmatpush3.bf16.msra.mxu1 %v2320_v8  ;;  %vm1360_vm9 = vcmask 1043456  }
 0x23d   : > { %2089 = vmatprep.subr.bf16.mxu1 %v2630_v2  ;;  %v757_v21 = vunpack.c.0.s8 %v756_v17  ;;  %v789_v25 = vunpack.c.0.s8 %v788_v20  ;;  %v1043_v8 = vld [vmem:[#allocation2] sm:$0xf] }
 0x23e   : > { %2082 = vmatpush3.bf16.msra.mxu0 %v2319_v3 }
 0x23f   : > { %2095 = vmatprep.subr.bf16.mxu0 %v2630_v2  ;;  %v2009_v6 = vld [vmem:[%s3391_s13 + $0x1] ss:$0 sm:$0xff]  ;;  %v3062_v26 = vsub.s32 %v757_v21, %v759_v22  ;;  %v3064_v32 = vsub.s32 %v789_v25, %v759_v22 }
 0x240   : > { %2090 = vmatpush3.bf16.msra.mxu1 %v2321_v13  ;;  %v1046_v13 = vld [vmem:[#allocation2 + $0xc] sm:$0xf] }
 0x241   : > { %2084 = vmatmul.mubr.msk.bf16.vlgmr.msra.gmra.mrb[0].mxu0 %vm631_vm6, %v603_v5  ;;  %2101 = vmatprep.subr.bf16.mxu1 %v2630_v2  ;;  %p2030_p5 = scmp.ne.s32.totalorder %s3392_s16, 1 }
 0x242   : > { %2097 = vmatprep.mubr.msk.bf16.mxu0 %vm2631_vm5, %v2630_v2  ;;  %vm2640_vm10 = vmmov (!%p2030_p5), 0   ;;  %s2641_s1 = smov (!%p2030_p5), 16   ;;  %s2642_s19 = smov (!%p2030_p5), 8   ;;  %vm1743_vm11 = vcmask (!%p2030_p5), 130048   ;;  %vm1745_vm12 = vcmask (!%p2030_p5), 195584  }
 0x243   : > { %2092 = vmatmul.mubr.msk.bf16.vlgmr.msra.gmra.mrb[0].mxu1 %vm631_vm6, %v605_v15  ;;  %s2643_s8 = smov (!%p2030_p5), 24   ;;  %s3393_s5 = sld [smem:[#allocation35_spill]] (!%p2030_p5) }
 0x244   : > { %2103 = vmatprep.mubr.msk.bf16.mxu1 %vm2631_vm5, %v2630_v2 }
 0x314   : > { %v669_v7 = vpop.f32.mrb[0].mxu0 }
 0x315   : > { %v670_v9 = vadd.f32 %v2009_v6, %v669_v7  ;;  %v2085_v10 = vpop.f32.mrb[1].mxu0 }
 0x316   : > { %v672_v11 = vpop.f32.mrb[2].mxu0  ;;  %v737_v14 = vpop.f32.mrb[0].mxu1 }
 0x317   : > { %750 = vrot.lane.b32.xlu1 %v670_v9, %s2632_s9  ;;  %744 = vrot.lane.b32.xlu0 %v670_v9, %s2633_s21  ;;  %v2086_v12 = vpop.f32.mrb[3].mxu0  ;;  %v2093_v15 = vpop.f32.mrb[1].mxu1 }
 0x318   : > { %v1045_v12 = vld [vmem:[#allocation2 + $0x8] sm:$0xf]  ;;  %v740_v16 = vpop.f32.mrb[2].mxu1 }
 0x319   : > { %v2094_v17 = vpop.f32.mrb[3].mxu1 }
 0x31b   : > { %747 = vrot.lane.b32.xlu0 %v670_v9, %s2634_s17 }
 0x389   : > { %v751_v23 = vpop.permute.xlu1 %750  ;;  %v745_v24 = vpop.permute.xlu0 %744 }
 0x38a   : > { %v769_v27 = vcombine.low %v745_v24, %v751_v23  ;;  %v770_v28 = vcombine.high %v745_v24, %v751_v23 }
 0x38c   : > { %v777_v33 = vrot.slane %v769_v27, %v3062_v26  ;;  %v784_v34 = vrot.slane %v770_v28, %v3062_v26 }
 0x38d   : > { %v748_v29 = vpop.permute.xlu0 %747 }
 0x38e   : > { %v753_v30 = vcombine.low %v670_v9, %v748_v29  ;;  %v754_v31 = vcombine.high %v670_v9, %v748_v29  ;;  %v1044_v9 = vld [vmem:[#allocation2 + $0x4] sm:$0xf] }
 0x390   : > { %v761_v35 = vrot.slane %v753_v30, %v3062_v26  ;;  %v768_v36 = vrot.slane %v754_v31, %v3062_v26 }
 0x392   : > { %v785_v37 = vcombine.low %v761_v35, %v777_v33  ;;  %v786_v38 = vcombine.high %v761_v35, %v777_v33  ;;  %v801_v39 = vcombine.low %v768_v36, %v784_v34  ;;  %v802_v40 = vcombine.high %v768_v36, %v784_v34 }
 0x394   : > { %v793_v41 = vrot.slane %v785_v37, %v3064_v32  ;;  %v800_v42 = vrot.slane %v786_v38, %v3064_v32  ;;  %v809_v43 = vrot.slane %v801_v39, %v3064_v32  ;;  %v816_v44 = vrot.slane %v802_v40, %v3064_v32 }
 0x395   : > { %v2637_v40 = vmov 0  }
 0x396   : > { %v821_v45 = vcombine.low %v793_v41, %v800_v42  ;;  %v2018_v46 = vcombine.high %v793_v41, %v800_v42  ;;  %v837_v47 = vcombine.low %v809_v43, %v816_v44  ;;  %v2019_v48 = vcombine.high %v809_v43, %v816_v44  ;;  %2317 = vset.pattern.permute.xlu1 %v2637_v40  ;;  %v2014_v41 = vld [vmem:[%s3391_s13 + $0x2] ss:$0 sm:$0xff]  ;;  %v1233_v43 = vld [vmem:[#allocation3 + $0x8] sm:$0xff]  ;;  %v1232_v44 = vld [vmem:[#allocation3] sm:$0xff] }
 0x397   : > { %2316 = vset.pattern.permute.xlu0 %v2637_v40  ;;  %v738_v42 = vadd.f32 %v2014_v41, %v737_v14 }
 0x398   : > { %v828_v49 = vrot.slane %v821_v45, %v3062_v26  ;;  %v836_v50 = vrot.slane %v2018_v46, %v3062_v26  ;;  %v844_v51 = vrot.slane %v837_v47, %v3062_v26  ;;  %v852_v52 = vrot.slane %v2019_v48, %v3062_v26 }
 0x39a   : > { %v853_v53 = vcombine.low %v828_v49, %v836_v50  ;;  %v869_v54 = vcombine.low %v844_v51, %v852_v52  ;;  %v854_v55 = vcombine.high %v828_v49, %v836_v50  ;;  %v870_v56 = vcombine.high %v844_v51, %v852_v52 }
 0x39c   : > { %v861_v57 = vrot.slane %v853_v53, %v3064_v32  ;;  %v877_v58 = vrot.slane %v869_v54, %v3064_v32  ;;  %v868_v61 = vrot.slane %v854_v55, %v3064_v32  ;;  %v884_v62 = vrot.slane %v870_v56, %v3064_v32  ;;  %v3126_v53 = vld [vmem:[#allocation3 + $0x18] sm:$0xff]  ;;  %v3128_v54 = vld [vmem:[#allocation3 + $0x10] sm:$0xff] }
 0x39e   : > { %v885_v59 = vcombine.low %v861_v57, %v877_v58  ;;  %v886_v60 = vcombine.high %v861_v57, %v877_v58  ;;  %v887_v4 = vcombine.low %v868_v61, %v884_v62  ;;  %v888_v5 = vcombine.high %v868_v61, %v884_v62 }
 0x3a0   : > { %v889_v63 = vpack.c.bf16 %v885_v59, %v885_v59  ;;  %v890_v0 = vpack.c.bf16 %v886_v60, %v886_v60  ;;  %v891_v6 = vpack.c.bf16 %v887_v4, %v887_v4  ;;  %v892_v7 = vpack.c.bf16 %v888_v5, %v888_v5 }
 0x3a2   : > { %v1052_v1 = vsel %vm1047_vm7, %v889_v63, 0  ;;  %v1098_v3 = vsel %vm1047_vm7, %v890_v0, 0  ;;  %v1144_v10 = vsel %vm1047_vm7, %v891_v6, 0  ;;  %v1190_v11 = vsel %vm1047_vm7, %v892_v7, 0 }
 0x3a3   : > { %2096 = vmatpush3.bf16.xpose.msra.mxu0 %v1052_v1  ;;  %2102 = vmatpush3.bf16.xpose.msra.mxu1 %v1098_v3 }
 0x3a4   : > { %2107 = vmatprep.subr.bf16.mxu0 %v2630_v2  ;;  %2113 = vmatprep.subr.bf16.mxu1 %v2630_v2 }
 0x3aa   : > { %2098 = vmatmul.mubr.msk.bf16.vlgmr.msra.gmra.mrb[4].mxu0 %vm1047_vm7, %v1043_v8  ;;  %2104 = vmatmul.mubr.msk.bf16.vlgmr.msra.gmra.mrb[4].mxu1 %vm1047_vm7, %v1044_v9 }
 0x3ab   : > { %2108 = vmatpush3.bf16.xpose.msra.mxu0 %v1144_v10  ;;  %2114 = vmatpush3.bf16.xpose.msra.mxu1 %v1190_v11 }
 0x3ac   : > { %2109 = vmatprep.mubr.msk.bf16.mxu0 %vm2631_vm5, %v2630_v2  ;;  %2115 = vmatprep.mubr.msk.bf16.mxu1 %vm2631_vm5, %v2630_v2 }
 0x3ad   : > { %2119 = vmatprep.subr.bf16.mxu0 %v2630_v2  ;;  %2125 = vmatprep.subr.bf16.mxu1 %v2630_v2 }
 0x3b2   : > { %2110 = vmatmul.mubr.msk.bf16.vlgmr.msra.gmra.mrb[8].mxu0 %vm1047_vm7, %v1045_v12  ;;  %2116 = vmatmul.mubr.msk.bf16.vlgmr.msra.gmra.mrb[8].mxu1 %vm1047_vm7, %v1046_v13 }
 0x3b3   : > { %2121 = vmatprep.mubr.msk.bf16.mxu0 %vm2631_vm5, %v2630_v2  ;;  %2127 = vmatprep.mubr.msk.bf16.mxu1 %vm2631_vm5, %v2630_v2 }
 0x47d   : > { %v3102_v18 = vpop.f32.mrb[4].mxu0  ;;  %v3104_v19 = vpop.f32.mrb[4].mxu1 }
 0x47e   : > { %v2099_v20 = vpop.f32.mrb[5].mxu0  ;;  %v2105_v21 = vpop.f32.mrb[5].mxu1  ;;  %v1239_v22 = vsel %vm1047_vm7, %v3104_v19, -inf  ;;  %v1236_v23 = vsel %vm1047_vm7, %v3102_v18, -inf }
 0x47f   : > { %1240 = vmax.xlane.f32.xlu0 %v1239_v22  ;;  %v1137_v24 = vpop.f32.mrb[6].mxu1  ;;  %1237 = vmax.xlane.f32.xlu1 %v1236_v23  ;;  %v1091_v25 = vpop.f32.mrb[6].mxu0 }
 0x480   : > { %v2100_v27 = vpop.f32.mrb[7].mxu0  ;;  %v2106_v28 = vpop.f32.mrb[7].mxu1 }
 0x485   : > { %v3110_v29 = vpop.f32.mrb[8].mxu0  ;;  %v3112_v30 = vpop.f32.mrb[8].mxu1 }
 0x486   : > { %v2111_v31 = vpop.f32.mrb[9].mxu0  ;;  %v2117_v33 = vpop.f32.mrb[9].mxu1  ;;  %v1245_v34 = vsel %vm1047_vm7, %v3112_v30, -inf  ;;  %v1242_v35 = vsel %vm1047_vm7, %v3110_v29, -inf }
 0x487   : > { %v1229_v36 = vpop.f32.mrb[10].mxu1  ;;  %1246 = vmax.xlane.f32.xlu1 %v1245_v34  ;;  %1243 = vmax.xlane.f32.xlu0 %v1242_v35  ;;  %v1183_v37 = vpop.f32.mrb[10].mxu0 }
 0x488   : > { %v2112_v38 = vpop.f32.mrb[11].mxu0  ;;  %v2118_v39 = vpop.f32.mrb[11].mxu1 }
 0x498   : > { %897 = vrot.lane.b32.xlu1 %v738_v42, %s2634_s17 }
 0x49c   : > { %900 = vrot.lane.b32.xlu1 %v738_v42, %s2632_s9 }
 0x49d   : > { %894 = vrot.lane.b32.xlu0 %v738_v42, %s2633_s21 }
 0x50c   : > { %v1241_v45 = vpop.xlane.xlu0 %1240  ;;  %v1238_v46 = vpop.xlane.xlu1 %1237 }
 0x50d   : > { %v1249_v47 = vmax.f32 %v1233_v43, %v1241_v45  ;;  %v1248_v48 = vmax.f32 %v1232_v44, %v1238_v46 }
 0x50f   : > { %v1253_v49 = vsub.f32 %v1233_v43, %v1249_v47  ;;  %1551 = vst.msk [vmem:[#allocation3 + $0x8] sm:$0xff] %vm1320_vm8, %v1249_v47  ;;  %v1252_v50 = vsub.f32 %v1232_v44, %v1248_v48  ;;  %1550 = vst.msk [vmem:[#allocation3] sm:$0xff] %vm1320_vm8, %v1248_v48  ;;  %1271 = vperm.xlu1 %2317, %v1249_v47   ;;  %1266 = vperm.xlu0 %2316, %v1248_v48  }
 0x511   : > { %v1258_v51 = vmul.f32 1.442695, %v1253_v49  ;;  %v1256_v52 = vmul.f32 1.442695, %v1252_v50 }
 0x513   : > { %2322 = vpow2.f32 %v1258_v51 }
 0x514   : > { %2324 = vpow2.f32 %v1256_v52  ;;  %v1247_v55 = vpop.xlane.xlu1 %1246  ;;  %v1244_v56 = vpop.xlane.xlu0 %1243 }
 0x515   : > { %v3131_v57 = vmax.f32 %v3126_v53, %v1247_v55  ;;  %v3134_v58 = vmax.f32 %v3128_v54, %v1244_v56 }
 0x517   : > { %v1255_v59 = vsub.f32 %v3126_v53, %v3131_v57  ;;  %1553 = vst.msk [vmem:[#allocation3 + $0x18] sm:$0xff] %vm1320_vm8, %v3131_v57  ;;  %v1254_v60 = vsub.f32 %v3128_v54, %v3134_v58  ;;  %1552 = vst.msk [vmem:[#allocation3 + $0x10] sm:$0xff] %vm1320_vm8, %v3134_v58  ;;  %1281 = vperm.xlu0 %2316, %v3131_v57   ;;  %1276 = vperm.xlu1 %2317, %v3134_v58   ;;  %v1298_v53 = vld [vmem:[#allocation4 + $0x10] sm:$0xff]  ;;  %v1299_v57 = vld [vmem:[#allocation4 + $0x18] sm:$0xff] }
 0x518   : > { %v898_v61 = vpop.permute.xlu1 %897  ;;  %v895_v0 = vpop.permute.xlu0 %894 }
 0x519   : > { %v903_v62 = vcombine.low %v738_v42, %v898_v61  ;;  %v904_v63 = vcombine.high %v738_v42, %v898_v61 }
 0x51b   : > { %v911_v7 = vrot.slane %v903_v62, %v3062_v26  ;;  %v918_v8 = vrot.slane %v904_v63, %v3062_v26 }
 0x51c   : > { %v901_v1 = vpop.permute.xlu1 %900 }
 0x51d   : > { %v3146_v3 = vpop.eup %2322  ;;  %v919_v4 = vcombine.low %v895_v0, %v901_v1  ;;  %v920_v5 = vcombine.high %v895_v0, %v901_v1 }
 0x51e   : > { %v3148_v6 = vpop.eup %2324  ;;  %1336 = vperm.xlu1 %2317, %v3146_v3  }
 0x51f   : > { %v927_v9 = vrot.slane %v919_v4, %v3062_v26  ;;  %v934_v10 = vrot.slane %v920_v5, %v3062_v26  ;;  %1331 = vperm.xlu0 %2316, %v3148_v6  }
 0x521   : > { %v935_v11 = vcombine.low %v911_v7, %v927_v9  ;;  %v936_v12 = vcombine.high %v911_v7, %v927_v9  ;;  %v951_v13 = vcombine.low %v918_v8, %v934_v10  ;;  %v952_v14 = vcombine.high %v918_v8, %v934_v10 }
 0x523   : > { %v943_v15 = vrot.slane %v935_v11, %v3064_v32  ;;  %v950_v16 = vrot.slane %v936_v12, %v3064_v32  ;;  %v959_v17 = vrot.slane %v951_v13, %v3064_v32  ;;  %v966_v20 = vrot.slane %v952_v14, %v3064_v32 }
 0x525   : > { %v971_v21 = vcombine.low %v943_v15, %v950_v16  ;;  %v2020_v22 = vcombine.high %v943_v15, %v950_v16  ;;  %v987_v23 = vcombine.low %v959_v17, %v966_v20  ;;  %v2021_v24 = vcombine.high %v959_v17, %v966_v20 }
 0x526   : > { %v1260_v20 = vmul.f32 1.442695, %v1254_v60 }
 0x527   : > { %v978_v25 = vrot.slane %v971_v21, %v3062_v26  ;;  %v986_v27 = vrot.slane %v2020_v22, %v3062_v26  ;;  %v994_v28 = vrot.slane %v987_v23, %v3062_v26  ;;  %v1002_v31 = vrot.slane %v2021_v24, %v3062_v26  ;;  %v1297_v24 = vld [vmem:[#allocation4 + $0x8] sm:$0xff] }
 0x529   : > { %v1003_v33 = vcombine.low %v978_v25, %v986_v27  ;;  %v1019_v34 = vcombine.low %v994_v28, %v1002_v31  ;;  %v1004_v35 = vcombine.high %v978_v25, %v986_v27  ;;  %v1020_v36 = vcombine.high %v994_v28, %v1002_v31  ;;  %v1296_v27 = vld [vmem:[#allocation4] sm:$0xff] }
 0x52a   : > { %v1301_v28 = vmul.f32 %v3146_v3, %v1297_v24  ;;  %v1300_v31 = vmul.f32 %v3148_v6, %v1296_v27  ;;  %v1326_v3 = vld [vmem:[#allocation5 + $0x8] sm:$0xff]  ;;  %v1325_v6 = vld [vmem:[#allocation5] sm:$0xff] }
 0x52b   : > { %v1011_v37 = vrot.slane %v1003_v33, %v3064_v32  ;;  %v1027_v38 = vrot.slane %v1019_v34, %v3064_v32  ;;  %v1018_v39 = vrot.slane %v1004_v35, %v3064_v32  ;;  %v1034_v40 = vrot.slane %v1020_v36, %v3064_v32 }
 0x52d   : > { %v1035_v41 = vcombine.low %v1011_v37, %v1027_v38  ;;  %v1036_v42 = vcombine.high %v1011_v37, %v1027_v38  ;;  %v1037_v43 = vcombine.low %v1018_v39, %v1034_v40  ;;  %v1038_v44 = vcombine.high %v1018_v39, %v1034_v40 }
 0x52f   : > { %v1039_v45 = vpack.c.bf16 %v1035_v41, %v1035_v41  ;;  %v1040_v46 = vpack.c.bf16 %v1036_v42, %v1036_v42  ;;  %v1041_v47 = vpack.c.bf16 %v1037_v43, %v1037_v43  ;;  %v1042_v48 = vpack.c.bf16 %v1038_v44, %v1038_v44 }
 0x531   : > { %v1362_v49 = vsel %vm1360_vm9, %v1039_v45, 0  ;;  %v1408_v50 = vsel %vm1360_vm9, %v1040_v46, 0  ;;  %v1454_v51 = vsel %vm1360_vm9, %v1041_v47, 0  ;;  %v1500_v52 = vsel %vm1360_vm9, %v1042_v48, 0 }
 0x532   : > { %2120 = vmatpush3.bf16.msra.mxu0 %v1362_v49  ;;  %2126 = vmatpush3.bf16.msra.mxu1 %v1408_v50 }
 0x533   : > { %2131 = vmatprep.subr.bf16.mxu0 %v2630_v2  ;;  %2137 = vmatprep.subr.bf16.mxu1 %v2630_v2 }
 0x58e   : > { %v1272_v55 = vpop.permute.xlu1 %1271  ;;  %v1267_v56 = vpop.permute.xlu0 %1266 }
 0x58f   : > { %v1285_v61 = vsub.f32 %v3104_v19, %v1272_v55  ;;  %v1284_v62 = vsub.f32 %v3102_v18, %v1267_v56  ;;  %v1328_v55 = vld [vmem:[#allocation5 + $0x18] sm:$0xff] }
 0x591   : > { %v1290_v63 = vmul.f32 1.442695, %v1285_v61  ;;  %v1288_v0 = vmul.f32 1.442695, %v1284_v62 }
 0x593   : > { %2326 = vpow2.f32 %v1290_v63 }
 0x594   : > { %2328 = vpow2.f32 %v1288_v0 }
 0x596   : > { %v1277_v1 = vpop.permute.xlu1 %1276  ;;  %v1282_v4 = vpop.permute.xlu0 %1281 }
 0x597   : > { %v1286_v5 = vsub.f32 %v3110_v29, %v1277_v1  ;;  %v1287_v7 = vsub.f32 %v3112_v30, %v1282_v4 }
 0x599   : > { %v1292_v8 = vmul.f32 1.442695, %v1286_v5  ;;  %v1294_v9 = vmul.f32 1.442695, %v1287_v7 }
 0x59b   : > { %2330 = vpow2.f32 %v1292_v8 }
 0x59c   : > { %2332 = vpow2.f32 %v1294_v9 }
 0x59d   : > { %v2327_v10 = vpop.eup %2326  ;;  %2334 = vpow2.f32 %v1260_v20  ;;  %v1337_v25 = vpop.permute.xlu1 %1336 }
 0x59e   : > { %v2329_v11 = vpop.eup %2328  ;;  %v1307_v19 = vsel %vm1047_vm7, %v2327_v10, 0.0  ;;  %v1354_v12 = vpack.c.bf16 %v2327_v10, %v2327_v10  ;;  %v1332_v23 = vpop.permute.xlu0 %1331  ;;  %v1350_v39 = vmul.f32 %v1337_v25, %v1326_v3 }
 0x59f   : > { %1308 = vadd.xlane.f32.xlu0 %v1307_v19  ;;  %v1304_v18 = vsel %vm1047_vm7, %v2329_v11, 0.0  ;;  %v1353_v13 = vpack.c.bf16 %v2329_v11, %v2329_v11  ;;  %v1349_v40 = vmul.f32 %v1332_v23, %v1325_v6 }
 0x5a0   : > { %1305 = vadd.xlane.f32.xlu1 %v1304_v18  ;;  %2128 = vmatmul.mubr.msk.bf16.vlgmr.msra.gmra.mrb[12].mxu1 %vm1047_vm7, %v1354_v12 }
 0x5a1   : > { %2122 = vmatmul.mubr.msk.bf16.vlgmr.msra.gmra.mrb[12].mxu0 %vm1047_vm7, %v1353_v13  ;;  %2138 = vmatpush3.bf16.msra.mxu1 %v1500_v52  ;;  %v2638_v13 = vmov (!%p2030_p5), 0  }
 0x5a2   : > { %2132 = vmatpush3.bf16.msra.mxu0 %v1454_v51  ;;  %2133 = vmatprep.mubr.msk.bf16.mxu0 %vm2631_vm5, %v2630_v2  ;;  %v1327_v51 = vld [vmem:[#allocation5 + $0x10] sm:$0xff] }
 0x5a3   : > { %2139 = vmatprep.mubr.msk.bf16.mxu1 %vm2631_vm5, %v2630_v2  ;;  %v1262_v2 = vmul.f32 1.442695, %v1255_v59 }
 0x5a5   : > { %v2331_v29 = vpop.eup %2330  ;;  %2336 = vpow2.f32 %v1262_v2 }
 0x5a6   : > { %v2333_v30 = vpop.eup %2332  ;;  %v1310_v14 = vsel %vm1047_vm7, %v2331_v29, 0.0  ;;  %v1355_v15 = vpack.c.bf16 %v2331_v29, %v2331_v29 }
 0x5a7   : > { %1311 = vadd.xlane.f32.xlu0 %v1310_v14  ;;  %v1313_v16 = vsel %vm1047_vm7, %v2333_v30, 0.0  ;;  %v1356_v17 = vpack.c.bf16 %v2333_v30, %v2333_v30  ;;  %v2335_v21 = vpop.eup %2334 }
 0x5a8   : > { %1314 = vadd.xlane.f32.xlu1 %v1313_v16  ;;  %v1302_v59 = vmul.f32 %v2335_v21, %v1298_v53 }
 0x5a9   : > { %2134 = vmatmul.mubr.msk.bf16.vlgmr.msra.gmra.mrb[16].mxu0 %vm1047_vm7, %v1355_v15  ;;  %2140 = vmatmul.mubr.msk.bf16.vlgmr.msra.gmra.mrb[16].mxu1 %vm1047_vm7, %v1356_v17  ;;  %v2639_v17 = vmov (!%p2030_p5), 0.0  }
 0x5aa   : > { %2143 = vmatprep.subr.bf16.mxu0 (!%p2030_p5), %v2639_v17  ;;  %2147 = vmatprep.mubr.msk.bf16.mxu0 (!%p2030_p5), %vm2640_vm10, %v2639_v17 }
 0x5af   : > { %v2337_v22 = vpop.eup %2336 }
 0x5b0   : > { %v1303_v34 = vmul.f32 %v2337_v22, %v1299_v57 }
 0x5b9   : > { %1341 = vperm.xlu1 %2317, %v2335_v21  }
 0x5bd   : > { %1346 = vperm.xlu0 %2316, %v2337_v22   ;;  %2339 = vset.pattern.permute.xlu1 (!%p2030_p5), %v2638_v13 }
 0x5c1   : > { %2338 = vset.pattern.permute.xlu0 (!%p2030_p5), %v2638_v13  ;;  %v2034_v13 = vld [vmem:[%s3393_s5 + $0x3] ss:$0 sm:$0xff] (!%p2030_p5) }
 0x62c   : > { %v1309_v54 = vpop.xlane.xlu0 %1308 }
 0x62d   : > { %v1306_v58 = vpop.xlane.xlu1 %1305  ;;  %v1317_v60 = vadd.f32 %v1309_v54, %v1301_v28 }
 0x62e   : > { %v1316_v33 = vadd.f32 %v1306_v58, %v1300_v31 }
 0x62f   : > { %1322 = vst.msk [vmem:[#allocation4 + $0x8] sm:$0xff] %vm1320_vm8, %v1317_v60 }
 0x630   : > { %1321 = vst.msk [vmem:[#allocation4] sm:$0xff] %vm1320_vm8, %v1316_v33 }
 0x634   : > { %v1312_v35 = vpop.xlane.xlu0 %1311 }
 0x635   : > { %v1315_v36 = vpop.xlane.xlu1 %1314  ;;  %v1318_v37 = vadd.f32 %v1312_v35, %v1302_v59 }
 0x636   : > { %v1319_v38 = vadd.f32 %v1315_v36, %v1303_v34  ;;  %v1563_v29 = vld [vmem:[#allocation4 + $0x8] sm:$0xff] (!%p2030_p5) }
 0x637   : > { %1323 = vst.msk [vmem:[#allocation4 + $0x10] sm:$0xff] %vm1320_vm8, %v1318_v37  ;;  %v1562_v12 = vld [vmem:[#allocation4] sm:$0xff] (!%p2030_p5) }
 0x638   : > { %1324 = vst.msk [vmem:[#allocation4 + $0x18] sm:$0xff] %vm1320_vm8, %v1319_v38  ;;  %v2340_v37 = vld [vmem:[#allocation12 + $0x30] sm:$0xff] (!%p2030_p5)  }
 0x639   : > { %v1342_v52 = vpop.permute.xlu1 %1341  ;;  %2144 = vmatpush3.bf16.msra.mxu0 (!%p2030_p5), %v2340_v37 }
 0x63a   : > { %v1351_v61 = vmul.f32 %v1342_v52, %v1327_v51  ;;  %2145 = vmatprep.subr.bf16.mxu0 (!%p2030_p5), %v2639_v17 }
 0x63c   : > { %v1347_v56 = vpop.permute.xlu0 %1346 }
 0x63d   : > { %v1352_v62 = vmul.f32 %v1347_v56, %v1328_v55 }
 0x63e   : > { %v1564_v19 = vld [vmem:[#allocation4 + $0x10] sm:$0xff] (!%p2030_p5) }
 0x63f   : > { %v1565_v18 = vld [vmem:[#allocation4 + $0x18] sm:$0xff] (!%p2030_p5)  ;;  %2342 = vrcp.f32 (!%p2030_p5), %v1564_v19 }
 0x640   : > { %2344 = vrcp.f32 (!%p2030_p5), %v1562_v12 }
 0x641   : > { %2346 = vrcp.f32 (!%p2030_p5), %v1565_v18 }
 0x642   : > { %2348 = vrcp.f32 (!%p2030_p5), %v1563_v29 }
 0x649   : > { %v2343_v30 = vpop.eup (!%p2030_p5), %2342 }
 0x64a   : > { %v2345_v14 = vpop.eup (!%p2030_p5), %2344  ;;  %1582 = vperm.xlu1 (!%p2030_p5), %2339, %v2343_v30  }
 0x64b   : > { %v2347_v15 = vpop.eup (!%p2030_p5), %2346  ;;  %1572 = vperm.xlu0 (!%p2030_p5), %2338, %v2345_v14  }
 0x64c   : > { %v2349_v16 = vpop.eup (!%p2030_p5), %2348 }
 0x64e   : > { %1587 = vperm.xlu1 (!%p2030_p5), %2339, %v2347_v15  }
 0x64f   : > { %1577 = vperm.xlu0 (!%p2030_p5), %2338, %v2349_v16  }
 0x673   : > { %v1444_v41 = vpop.f32.mrb[12].mxu1 }
 0x674   : > { %v1398_v42 = vpop.f32.mrb[12].mxu0  ;;  %v1543_v43 = vadd.f32 %v1444_v41, %v1350_v39  ;;  %v2129_v44 = vpop.f32.mrb[13].mxu1 }
 0x675   : > { %v1542_v45 = vadd.f32 %v1398_v42, %v1349_v40  ;;  %v2123_v46 = vpop.f32.mrb[13].mxu0  ;;  %v1447_v47 = vpop.f32.mrb[14].mxu1  ;;  %v2341_v44 = vld [vmem:[#allocation12 + $0x38] sm:$0xff] (!%p2030_p5)  }
 0x676   : > { %1547 = vst.msk [vmem:[#allocation5 + $0x8] sm:$0xff] %vm1047_vm7, %v1543_v43  ;;  %v1401_v48 = vpop.f32.mrb[14].mxu0  ;;  %v2130_v49 = vpop.f32.mrb[15].mxu1  ;;  %2146 = vmatpush3.bf16.msra.mxu0 (!%p2030_p5), %v2341_v44 }
 0x677   : > { %1546 = vst.msk [vmem:[#allocation5] sm:$0xff] %vm1047_vm7, %v1542_v45  ;;  %v2124_v50 = vpop.f32.mrb[15].mxu0 }
 0x679   : > { %1557 = sbr.rel (%p2030_p5) target bundleno = 2100 (0x834), region = 64 }
 0x67c   : > { %v1490_v63 = vpop.f32.mrb[16].mxu0  ;;  %v1536_v0 = vpop.f32.mrb[16].mxu1 }
 0x67d   : > { %v1544_v1 = vadd.f32 %v1490_v63, %v1351_v61  ;;  %v1545_v4 = vadd.f32 %v1536_v0, %v1352_v62  ;;  %v2135_v5 = vpop.f32.mrb[17].mxu0  ;;  %v2141_v7 = vpop.f32.mrb[17].mxu1  ;;  %v1559_v27 = vld [vmem:[#allocation5 + $0x8] sm:$0xff] (!%p2030_p5) }
 0x67e   : > { %v1493_v8 = vpop.f32.mrb[18].mxu0  ;;  %v1539_v9 = vpop.f32.mrb[18].mxu1  ;;  %v1558_v2 = vld [vmem:[#allocation5] sm:$0xff] (!%p2030_p5) }
 0x67f   : > { %1548 = vst.msk [vmem:[#allocation5 + $0x10] sm:$0xff] %vm1047_vm7, %v1544_v1  ;;  %1549 = vst.msk [vmem:[#allocation5 + $0x18] sm:$0xff] %vm1047_vm7, %v1545_v4  ;;  %v2136_v10 = vpop.f32.mrb[19].mxu0  ;;  %v2142_v11 = vpop.f32.mrb[19].mxu1 }
 0x686   : > { %v1560_v20 = vld [vmem:[#allocation5 + $0x10] sm:$0xff]  ;;  %v1561_v25 = vld [vmem:[#allocation5 + $0x18] sm:$0xff] }
 0x6c9   : > { %v1583_v21 = vpop.permute.xlu1 %1582 }
 0x6ca   : > { %v1573_v22 = vpop.permute.xlu0 %1572  ;;  %v1592_v23 = vmul.f32 %v1583_v21, %v1560_v20 }
 0x6cb   : > { %v1590_v24 = vmul.f32 %v1573_v22, %v1558_v2 }
 0x6cd   : > { %v1588_v28 = vpop.permute.xlu1 %1587  ;;  %v1594_v58 = vcombine.low %v1590_v24, %v1592_v23  ;;  %v1595_v60 = vcombine.high %v1590_v24, %v1592_v23 }
 0x6ce   : > { %v1593_v31 = vmul.f32 %v1588_v28, %v1561_v25  ;;  %v1578_v54 = vpop.permute.xlu0 %1577 }
 0x6cf   : > { %v1591_v33 = vmul.f32 %v1578_v54, %v1559_v27  ;;  %v1602_v59 = vrot.slane %v1594_v58, %v3062_v26  ;;  %v1609_v34 = vrot.slane %v1595_v60, %v3062_v26 }
 0x6d1   : > { %v1610_v53 = vcombine.low %v1591_v33, %v1593_v31  ;;  %v1611_v57 = vcombine.high %v1591_v33, %v1593_v31 }
 0x6d3   : > { %v1618_v35 = vrot.slane %v1610_v53, %v3062_v26  ;;  %v1625_v36 = vrot.slane %v1611_v57, %v3062_v26 }
 0x6d5   : > { %v1626_v38 = vcombine.low %v1602_v59, %v1618_v35  ;;  %v1627_v3 = vcombine.high %v1602_v59, %v1618_v35  ;;  %v1642_v6 = vcombine.low %v1609_v34, %v1625_v36  ;;  %v1643_v39 = vcombine.high %v1609_v34, %v1625_v36 }
 0x6d7   : > { %v1634_v40 = vrot.slane %v1626_v38, %v3064_v32  ;;  %v1641_v41 = vrot.slane %v1627_v3, %v3064_v32  ;;  %v1650_v42 = vrot.slane %v1642_v6, %v3064_v32  ;;  %v1657_v43 = vrot.slane %v1643_v39, %v3064_v32 }
 0x6d9   : > { %v1662_v45 = vcombine.low %v1634_v40, %v1641_v41  ;;  %v2031_v46 = vcombine.high %v1634_v40, %v1641_v41  ;;  %v1678_v47 = vcombine.low %v1650_v42, %v1657_v43  ;;  %v2032_v48 = vcombine.high %v1650_v42, %v1657_v43 }
 0x6db   : > { %v1669_v49 = vrot.slane %v1662_v45, %v3062_v26  ;;  %v1677_v50 = vrot.slane %v2031_v46, %v3062_v26  ;;  %v1685_v51 = vrot.slane %v1678_v47, %v3062_v26  ;;  %v1693_v52 = vrot.slane %v2032_v48, %v3062_v26 }
 0x6dd   : > { %v1695_v55 = vcombine.high %v1669_v49, %v1677_v50  ;;  %v1711_v56 = vcombine.high %v1685_v51, %v1693_v52  ;;  %v1694_v61 = vcombine.low %v1669_v49, %v1677_v50  ;;  %v1710_v62 = vcombine.low %v1685_v51, %v1693_v52 }
 0x6df   : > { %v1709_v63 = vrot.slane %v1695_v55, %v3064_v32  ;;  %v1725_v0 = vrot.slane %v1711_v56, %v3064_v32  ;;  %v1702_v1 = vrot.slane %v1694_v61, %v3064_v32  ;;  %v1718_v4 = vrot.slane %v1710_v62, %v3064_v32 }
 0x6e1   : > { %v1728_v5 = vcombine.low %v1709_v63, %v1725_v0  ;;  %v1727_v7 = vcombine.high %v1702_v1, %v1718_v4  ;;  %v1726_v8 = vcombine.low %v1702_v1, %v1718_v4  ;;  %v1729_v26 = vcombine.high %v1709_v63, %v1725_v0 }
 0x6e3   : > { %1735 = vrot.lane.b32.xlu1 %v1728_v5, %s2641_s1  ;;  %1731 = vrot.lane.b32.xlu0 %v1727_v7, %s2642_s19 }
 0x6e7   : > { %1739 = vrot.lane.b32.xlu0 %v1729_v26, %s2643_s8 }
 0x755   : > { %v1732_v9 = vpop.permute.xlu0 %1731  ;;  %v1736_v10 = vpop.permute.xlu1 %1735 }
 0x756   : > { %v1742_v11 = vsel %vm1047_vm7, %v1726_v8, %v1732_v9 }
 0x757   : > { %v1744_v19 = vsel %vm1743_vm11, %v1742_v11, %v1736_v10 }
 0x759   : > { %v1740_v12 = vpop.permute.xlu0 %1739 }
 0x75a   : > { %v1746_v32 = vsel %vm1745_vm12, %v1744_v19, %v1740_v12 }
 0x75b   : > { %v1747_v18 = vpack.c.bf16 %v1746_v32, %v1746_v32 }
 0x75d   : > { %2148 = vmatmul.mubr.msk.bf16.vlgmr.msra.gmra.mrb[0].mxu0 %vm631_vm6, %v1747_v18 }
 0x830   : > { %v1810_v29 = vpop.f32.mrb[0].mxu0 }
 0x831   : > { %v1811_v30 = vadd.f32 %v2034_v13, %v1810_v29  ;;  %v2149_v14 = vpop.f32.mrb[1].mxu0 }
 0x832   : > { %v1813_v15 = vpop.f32.mrb[2].mxu0 }
 0x833   : > { %1816 = vst.msk [vmem:[%s3029_s10] sm:$0xff] %vm631_vm6, %v1811_v30  ;;  %v2150_v16 = vpop.f32.mrb[3].mxu0 }
 0x834 PF: > { %s3394_s24 = sld [smem:[#allocation24_spill]]  ;;  %s3395_s15 = sld [smem:[#allocation23_spill]] }
 0x835   : > { %s3396_s12 = sld [smem:[#allocation31_spill]]  ;;  %s1833_s13 = sshll.u32 %s3029_s10, 4  ;;  %s3229_s13 = int_to_ptr.vmem [resolvable:$true] %s1833_s13 }
 0x836   : > { %s3397_s22 = sld [smem:[#allocation36_spill]]  ;;  %s1818_s1 = scalar_lea.sflag [#allocation8], %s3005_s4 }
 0x837   : > { %s2468_s19 = scalar_lea.vmem %s3229_s13, 128  ;;  %s2644_s8 = smov [#allocation14]  }
 0x838   : > { %p2469_p8 = scmp.ne.s32.totalorder %s3229_s13, %s2468_s19  ;;  %s2472_s7 = sshll.u32 %s2644_s8, 4  ;;  %s2473_s7 = int_to_ptr.vmem [resolvable:$false] %s2472_s7 }
 0x839   : > { %s2474_s10 = scalar_lea.vmem %s2473_s7, 256  ;;  %p2475_p0 = scmp.lt.s32.totalorder %s3229_s13, %s2473_s7 }
 0x83a   : > { %s2039_s25 = sshll.u32 %s3394_s24, 1  ;;  %p2476_p13 = scmp.lt.s32.totalorder %s2474_s10, %s2468_s19 }
 0x83b   : > { %s1829_s26 = sadd.s32 %s3395_s15, %s2039_s25  ;;  %p3399_p1 = scmp.ne.s32.totalorder %s3396_s12, 0 }
 0x83c   : > { %s2040_s9 = sshll.u32 %s1829_s26, 7  ;;  %s3398_s11 = smov %s3397_s22 }
 0x83d   : > { %s1831_s16 = scalar_lea.hbm %s3397_s22, %s2040_s9  ;;  %p2470_p2 = pnand %p2469_p8, %p3399_p1 }
 0x83e   : > { %p2477_p10 = por %p2476_p13, %p2475_p0 }
 0x83f   : > { %p2471_p7 = pneg %p2470_p2 }
 0x841   : > { %p2478_p4 = pnand %p2477_p10, %p2471_p7 }
 0x843   : > { %2481 = shalt.err (!%p2478_p4)
}
 0x844   : > { %s2482_s18 = scalar_lea.hbm %s1831_s16, 128  ;;  %s2486_s24 = scalar_lea.hbm %s3398_s11, 512 }
 0x845   : > { %p2483_p6 = scmp.ne.s32.totalorder %s1831_s16, %s2482_s18  ;;  %p2487_p12 = scmp.lt.u32.totalorder %s1831_s16, %s3398_s11 }
 0x846   : > { %p2488_p9 = scmp.lt.u32.totalorder %s2486_s24, %s2482_s18  ;;  %p2490_p8 = scmp.lt.u32.totalorder %s2482_s18, %s1831_s16 }
 0x847   : > { %p2484_p11 = pnand %p2483_p6, %p3399_p1 }
 0x848   : > { %p2489_p5 = por %p2488_p9, %p2487_p12 }
 0x849   : > { %p2485_p3 = pneg %p2484_p11 }
 0x84a   : > { %p2491_p2 = por %p2490_p8, %p2489_p5 }
 0x84c   : > { %p2492_p7 = pnand %p2491_p2, %p2485_p3 }
 0x84e   : > { %2495 = shalt.err (!%p2492_p7)
}
 0x84f   : > { %2161 = dma.vmem_to_hbm [thread:$0]  (%p3399_p1), %s3229_s13, 128, %s1831_s16, %s1818_s1  }
 0x850 PF: > { %s3400_s26 = sld [smem:[#allocation20_spill]]  ;;  %p2184_p0 = scmp.ge.s32.totalorder %s2614_s30, 2 }
 0x851   : > { %p3401_p13 = scmp.ne.s32.totalorder %s3370_s3, 0 }
 0x853   : > { %p2178_p10 = pnand %p2184_p0, %p3401_p13 }
 0x856   : > { %s1845_s9 = sand.u32 1, %s3400_s26  }
 0x857   : > { %s1846_s21 = scalar_lea.sflag [#allocation8], %s1845_s9 }
 0x858   : > { %2561 = dma.done.wait (!%p2178_p10), %s1846_s21, 128  }
 0x859   : > { %2563 = vsyncadd (!%p2178_p10), %s1846_s21, 4294967168  ;;  %s25_s30 = sadd.s32 1, %s2614_s30   ;;  %s3403_s18 = sld [smem:[#allocation19_spill]] }
 0x85a   : > { %p3256_p4 = scmp.ge.s32.totalorder %s25_s30, 10   ;;  %s3404_s21 = sld [smem:[#allocation21_spill]] }
 0x85b   : > { %s3405_s25 = sld [smem:[#allocation25_spill]]  ;;  %s3406_s3 = sld [smem:[#allocation30_spill]] }
 0x85c   : > { %s3407_s12 = sld [smem:[#allocation32_spill]]  ;;  %s3408_s19 = smov %s2574_s20 }
 0x85d   : > { %s3409_s20 = smov %s2926_s14  ;;  %s3410_s22 = smov %s2586_s23 }
 0x85e   : > { %s3411_s23 = smov %s2921_s28  ;;  %s3412_s24 = smov %s2602_s27 }
 0x85f   : > { %s3413_s26 = smov %s2610_s29  ;;  %s3414_s27 = smov %s3418_s6 }
 0x860   :  { %24 = sbr.rel (!%p3256_p4) target bundleno = 18 (0x12), region = 127 }
 0x861   : > { %s3415_s28 = smov %s3406_s3 }
 0x862   : > { %s3416_s29 = smov %s3407_s12 }
 0x867   :  { %1851 = vsyncpa [#allocation7], 1 }
 0x868   :  { %1853 = vsyncpa [#allocation7 + $0x1], 1 }
 0x869   :  { %1854 = vsyncpa [#allocation10], 1 }
 0x86a   :  { %1856 = vsyncpa [#allocation10 + $0x1], 1 }
 0x86b   :  { %1857 = vsyncpa [#allocation13], 1 }
 0x86c   :  { %1858 = vsyncpa [#allocation8], 1 }
 0x86d   :  { %1860 = vsyncpa [#allocation8 + $0x1], 1 }

</bundles_post_ra>
